<compile_context>
chip_gen: v6e
topology: v6e:2x2x1
jax: 0.10.0
libtpu: 0.0.40
codegen_flags: <defaults>
</compile_context>

<pallas_src>
import functools
import math

import jax
import jax.numpy as jnp
from jax.experimental import pallas as pl
from jax.experimental.pallas import tpu as pltpu


# ---------------------------------------------------------------------------
# Kernel
# ---------------------------------------------------------------------------
def _tfm_user_encoder_kernel(
    x_ref, mask_ref,
    wq_ref, bq_ref, wk_ref, bk_ref, wv_ref, bv_ref, wo_ref, bo_ref,
    ln1_g_ref, ln1_b_ref,
    w1_ref, b1_ref, w2_ref, b2_ref,
    ln2_g_ref, ln2_b_ref,
    wp_ref, bp_ref, uq_ref,
    o_ref,
    *, head_num,
):
    x = x_ref[...].astype(jnp.float32)        # (TB, S, H)
    mask = mask_ref[...].astype(jnp.float32)  # (TB, 1, S)  1=valid, 0=pad
    TB, S, H = x.shape
    dh = H // head_num
    NEG = jnp.float32(-1e9)

    def mm(t, w):
        # (TB, S, Din) @ (Din, Dout) -> (TB, S, Dout), f32 accumulation on MXU.
        tb, s, din = t.shape
        y = jnp.dot(t.reshape(tb * s, din), w,
                    preferred_element_type=jnp.float32)
        return y.reshape(tb, s, w.shape[-1])

    def layer_norm(t, g, b):
        mu = jnp.mean(t, axis=-1, keepdims=True)
        var = jnp.mean(jnp.square(t - mu), axis=-1, keepdims=True)
        return (t - mu) * jax.lax.rsqrt(var + 1e-5) * g + b

    def softmax_last(s):
        s = s - jnp.max(s, axis=-1, keepdims=True)
        e = jnp.exp(s)
        return e / jnp.sum(e, axis=-1, keepdims=True)

    # ---- multi-head self-attention (keys masked by his_mask) --------------
    q = mm(x, wq_ref[...]) + bq_ref[...]
    k = mm(x, wk_ref[...]) + bk_ref[...]
    v = mm(x, wv_ref[...]) + bv_ref[...]

    scale = 1.0 / math.sqrt(dh)
    attn_out = jnp.zeros((TB, S, H), jnp.float32)
    for hi in range(head_num):          # head_num is small & static: unrolled
        lo = hi * dh
        qh = q[:, :, lo:lo + dh]
        kh = k[:, :, lo:lo + dh]
        vh = v[:, :, lo:lo + dh]
        s_h = jnp.einsum('bqd,bkd->bqk', qh, kh,
                         preferred_element_type=jnp.float32) * scale
        s_h = jnp.where(mask > 0.5, s_h, NEG)      # (TB,1,S) broadcast over q
        p_h = softmax_last(s_h)
        ctx = jnp.einsum('bqk,bkd->bqd', p_h, vh,
                         preferred_element_type=jnp.float32)
        # per-head slice of the output projection, summed over heads
        attn_out = attn_out + mm(ctx, wo_ref[lo:lo + dh, :])
    attn_out = attn_out + bo_ref[...]

    h1 = layer_norm(x + attn_out, ln1_g_ref[...], ln1_b_ref[...])

    # ---- feed-forward ------------------------------------------------------
    ff = mm(jnp.maximum(mm(h1, w1_ref[...]) + b1_ref[...], 0.0),
            w2_ref[...]) + b2_ref[...]
    h2 = layer_norm(h1 + ff, ln2_g_ref[...], ln2_b_ref[...])

    # ---- attentive pooling: scaled_dp_attention(user_query, tanh(Wp h2), h2)
    key = jnp.tanh(mm(h2, wp_ref[...]) + bp_ref[...])           # (TB, S, H)
    uq = jnp.broadcast_to(uq_ref[...].astype(jnp.float32), (TB, 1, H))
    logits = jnp.einsum('bqh,bsh->bqs', uq, key,
                        preferred_element_type=jnp.float32) * (1.0 / math.sqrt(H))
    logits = jnp.where(mask > 0.5, logits, NEG)                 # (TB, 1, S)
    p = softmax_last(logits)
    user = jnp.einsum('bqs,bsh->bqh', p, h2,
                      preferred_element_type=jnp.float32)        # (TB, 1, H)

    o_ref[...] = user.reshape(TB, H).astype(o_ref.dtype)


# ---------------------------------------------------------------------------
# Wrapper
# ---------------------------------------------------------------------------
def _pick_batch_tile(B, S, H, itemsize, budget_bytes=2 << 20):
    """Largest batch tile (divisor of B) whose input slab stays ~<= budget.

    Keeps a few MiB per (double-buffered) tile: big enough to hit the HBM
    roofline, small enough for v7x's 64 MiB VMEM.
    """
    per_elem = S * H * itemsize
    if B * per_elem <= budget_bytes:
        return B
    best = 0
    for tb in range(8, B, 8):  # multiples of 8 keep blocks sublane-aligned
        if B % tb == 0 and tb * per_elem <= budget_bytes:
            best = tb
    return best if best else B


def init_tfm_user_encoder_params(key, hidden_dim, head_num, ffn_dim=None):
    """JAX analogue of TfmUserEncoder's learnable state (weights as [in, out])."""
    H = hidden_dim
    F = ffn_dim or H
    ks = jax.random.split(key, 8)

    def xavier(k, fan_in, fan_out):
        std = math.sqrt(2.0 / (fan_in + fan_out))
        return jax.random.normal(k, (fan_in, fan_out), jnp.float32) * std

    zeros = lambda n: jnp.zeros((1, n), jnp.float32)
    ones = lambda n: jnp.ones((1, n), jnp.float32)
    return {
        "wq": xavier(ks[0], H, H), "bq": zeros(H),
        "wk": xavier(ks[1], H, H), "bk": zeros(H),
        "wv": xavier(ks[2], H, H), "bv": zeros(H),
        "wo": xavier(ks[3], H, H), "bo": zeros(H),
        "ln1_g": ones(H), "ln1_b": zeros(H),
        "w1": xavier(ks[4], H, F), "b1": zeros(F),
        "w2": xavier(ks[5], F, H), "b2": zeros(H),
        "ln2_g": ones(H), "ln2_b": zeros(H),
        "wp": xavier(ks[6], H, H), "bp": zeros(H),   # userProject
        "uq": xavier(ks[7], 1, H),                   # user_query
    }


def tfm_user_encoder(news_embedding, his_mask, params, head_num, batch_tile=None):
    """Pallas implementation of TfmUserEncoder.forward.

    Args:
        news_embedding: [B, S, H]
        his_mask:       [B, S] (1 = valid, 0 = padding)
    Returns:
        user_embedding: [B, 1, H]
    """
    B, S, H = news_embedding.shape
    assert H % head_num == 0, (H, head_num)
    itemsize = jnp.dtype(news_embedding.dtype).itemsize
    TB = batch_tile or _pick_batch_tile(B, S, H, itemsize)
    assert B % TB == 0, (B, TB)
    grid = (B // TB,)

    mask3 = his_mask.reshape(B, 1, S).astype(jnp.float32)

    p = params
    ordered = (p["wq"], p["bq"], p["wk"], p["bk"], p["wv"], p["bv"],
               p["wo"], p["bo"], p["ln1_g"], p["ln1_b"],
               p["w1"], p["b1"], p["w2"], p["b2"], p["ln2_g"], p["ln2_b"],
               p["wp"], p["bp"], p["uq"])

    in_specs = (
        [pl.BlockSpec((TB, S, H), lambda b: (b, 0, 0)),
         pl.BlockSpec((TB, 1, S), lambda b: (b, 0, 0))]
        + [pl.BlockSpec(w.shape, lambda b: (0, 0)) for w in ordered]
    )
    out_specs = pl.BlockSpec((TB, H), lambda b: (b, 0))   # lane-dense 2-D output

    param_bytes = sum(int(w.size) * jnp.dtype(w.dtype).itemsize for w in ordered)
    cost = pl.CostEstimate(
        flops=int(2 * B * S * H * (7 * H) + 4 * B * S * S * H + 4 * B * S * H),
        transcendentals=int(B * S * (head_num * S + H + 4)),
        bytes_accessed=int((B * S * H + B * H) * itemsize + B * S * 4 + param_bytes),
    )

    kernel = functools.partial(_tfm_user_encoder_kernel, head_num=head_num)
    out2d = pl.pallas_call(
        kernel,
        out_shape=jax.ShapeDtypeStruct((B, H), news_embedding.dtype),
        grid_spec=pltpu.PrefetchScalarGridSpec(
            num_scalar_prefetch=0,
            grid=grid,
            in_specs=in_specs,
            out_specs=out_specs,
        ),
        compiler_params=pltpu.CompilerParams(
            dimension_semantics=("parallel",),
        ),
        cost_estimate=cost,
    )(news_embedding, mask3, *ordered)
    return out2d.reshape(B, 1, H)


# ---------------------------------------------------------------------------
# Pure-JAX reference (mirrors the PyTorch forward)
# ---------------------------------------------------------------------------
def tfm_user_encoder_ref(news_embedding, his_mask, params, head_num):
    x = news_embedding.astype(jnp.float32)
    B, S, H = x.shape
    dh = H // head_num
    mask = his_mask.astype(jnp.float32)            # (B, S)
    key_mask = mask[:, None, None, :]              # (B, 1, 1, S)

    def linear(t, w, b):
        return jnp.einsum('bsi,io->bso', t, w) + b

    def layer_norm(t, g, b):
        mu = jnp.mean(t, axis=-1, keepdims=True)
        var = jnp.mean(jnp.square(t - mu), axis=-1, keepdims=True)
        return (t - mu) / jnp.sqrt(var + 1e-5) * g + b

    q = linear(x, params["wq"], params["bq"]).reshape(B, S, head_num, dh)
    k = linear(x, params["wk"], params["bk"]).reshape(B, S, head_num, dh)
    v = linear(x, params["wv"], params["bv"]).reshape(B, S, head_num, dh)
    scores = jnp.einsum('bqnd,bknd->bnqk', q, k) / math.sqrt(dh)
    scores = jnp.where(key_mask > 0.5, scores, -1e9)
    probs = jax.nn.softmax(scores, axis=-1)
    ctx = jnp.einsum('bnqk,bknd->bqnd', probs, v).reshape(B, S, H)
    attn = jnp.einsum('bsi,io->bso', ctx, params["wo"]) + params["bo"]

    h1 = layer_norm(x + attn, params["ln1_g"], params["ln1_b"])
    ff = linear(jnp.maximum(linear(h1, params["w1"], params["b1"]), 0.0),
                params["w2"], params["b2"])
    h2 = layer_norm(h1 + ff, params["ln2_g"], params["ln2_b"])

    key = jnp.tanh(linear(h2, params["wp"], params["bp"]))
    logits = jnp.einsum('lh,bsh->bls', params["uq"], key) / math.sqrt(H)
    logits = jnp.where(mask[:, None, :] > 0.5, logits, -1e9)
    w = jax.nn.softmax(logits, axis=-1)
    return jnp.einsum('bls,bsh->blh', w, h2)       # (B, 1, H)


# ---------------------------------------------------------------------------
if __name__ == "__main__":
    key = jax.random.PRNGKey(0)
    batch_size, his_size, hidden_dim, head_num = 2, 8, 32, 4
    k_x, k_p = jax.random.split(key)

    news_embedding = jax.random.normal(
        k_x, (batch_size, his_size, hidden_dim), dtype=jnp.float32
    )
    # History mask: 1 = valid news, 0 = padding (batch 1 has 3 padded slots).
    his_mask = jnp.ones((batch_size, his_size), jnp.float32)
    his_mask = his_mask.at[1, 5:].set(0.0)

    params = init_tfm_user_encoder_params(k_p, hidden_dim, head_num)

    out = tfm_user_encoder(news_embedding, his_mask, params, head_num)
    out = jax.block_until_ready(out)

    ref = tfm_user_encoder_ref(news_embedding, his_mask, params, head_num)
    assert out.shape == (batch_size, 1, hidden_dim), out.shape
    assert jnp.allclose(out, ref, atol=1e-3, rtol=1e-3), float(
        jnp.max(jnp.abs(out - ref))
    )

    print("KERNEL_OK")
</pallas_src>

<mosaic_0001>
module attributes {stable_mosaic.version = 11 : i64} {
  func.func @_tfm_user_encoder_kernel(%arg0: i32, %arg1: memref<2x8x32xf32, #tpu.memory_space<vmem>>, %arg2: memref<2x1x8xf32, #tpu.memory_space<vmem>>, %arg3: memref<32x32xf32, #tpu.memory_space<vmem>>, %arg4: memref<1x32xf32, #tpu.memory_space<vmem>>, %arg5: memref<32x32xf32, #tpu.memory_space<vmem>>, %arg6: memref<1x32xf32, #tpu.memory_space<vmem>>, %arg7: memref<32x32xf32, #tpu.memory_space<vmem>>, %arg8: memref<1x32xf32, #tpu.memory_space<vmem>>, %arg9: memref<32x32xf32, #tpu.memory_space<vmem>>, %arg10: memref<1x32xf32, #tpu.memory_space<vmem>>, %arg11: memref<1x32xf32, #tpu.memory_space<vmem>>, %arg12: memref<1x32xf32, #tpu.memory_space<vmem>>, %arg13: memref<32x32xf32, #tpu.memory_space<vmem>>, %arg14: memref<1x32xf32, #tpu.memory_space<vmem>>, %arg15: memref<32x32xf32, #tpu.memory_space<vmem>>, %arg16: memref<1x32xf32, #tpu.memory_space<vmem>>, %arg17: memref<1x32xf32, #tpu.memory_space<vmem>>, %arg18: memref<1x32xf32, #tpu.memory_space<vmem>>, %arg19: memref<32x32xf32, #tpu.memory_space<vmem>>, %arg20: memref<1x32xf32, #tpu.memory_space<vmem>>, %arg21: memref<1x32xf32, #tpu.memory_space<vmem>>, %arg22: memref<2x32xf32, #tpu.memory_space<vmem>>) attributes {dimension_semantics = [#tpu.dimension_semantics<parallel>], iteration_bounds = array<i64: 1>, scalar_prefetch = 0 : i64, scratch_operands = 0 : i64, tpu.core_type = #tpu.core_type<tc>, window_params = [{transform_indices = @transform_0, window_bounds = array<i64: 2, 8, 32>}, {transform_indices = @transform_1, window_bounds = array<i64: 2, 1, 8>}, {pipeline_mode = #tpu.pipeline_mode<synchronous>, transform_indices = @transform_2, window_bounds = array<i64: 32, 32>}, {pipeline_mode = #tpu.pipeline_mode<synchronous>, transform_indices = @transform_3, window_bounds = array<i64: 1, 32>}, {pipeline_mode = #tpu.pipeline_mode<synchronous>, transform_indices = @transform_4, window_bounds = array<i64: 32, 32>}, {pipeline_mode = #tpu.pipeline_mode<synchronous>, transform_indices = @transform_5, window_bounds = array<i64: 1, 32>}, {pipeline_mode = #tpu.pipeline_mode<synchronous>, transform_indices = @transform_6, window_bounds = array<i64: 32, 32>}, {pipeline_mode = #tpu.pipeline_mode<synchronous>, transform_indices = @transform_7, window_bounds = array<i64: 1, 32>}, {pipeline_mode = #tpu.pipeline_mode<synchronous>, transform_indices = @transform_8, window_bounds = array<i64: 32, 32>}, {pipeline_mode = #tpu.pipeline_mode<synchronous>, transform_indices = @transform_9, window_bounds = array<i64: 1, 32>}, {pipeline_mode = #tpu.pipeline_mode<synchronous>, transform_indices = @transform_10, window_bounds = array<i64: 1, 32>}, {pipeline_mode = #tpu.pipeline_mode<synchronous>, transform_indices = @transform_11, window_bounds = array<i64: 1, 32>}, {pipeline_mode = #tpu.pipeline_mode<synchronous>, transform_indices = @transform_12, window_bounds = array<i64: 32, 32>}, {pipeline_mode = #tpu.pipeline_mode<synchronous>, transform_indices = @transform_13, window_bounds = array<i64: 1, 32>}, {pipeline_mode = #tpu.pipeline_mode<synchronous>, transform_indices = @transform_14, window_bounds = array<i64: 32, 32>}, {pipeline_mode = #tpu.pipeline_mode<synchronous>, transform_indices = @transform_15, window_bounds = array<i64: 1, 32>}, {pipeline_mode = #tpu.pipeline_mode<synchronous>, transform_indices = @transform_16, window_bounds = array<i64: 1, 32>}, {pipeline_mode = #tpu.pipeline_mode<synchronous>, transform_indices = @transform_17, window_bounds = array<i64: 1, 32>}, {pipeline_mode = #tpu.pipeline_mode<synchronous>, transform_indices = @transform_18, window_bounds = array<i64: 32, 32>}, {pipeline_mode = #tpu.pipeline_mode<synchronous>, transform_indices = @transform_19, window_bounds = array<i64: 1, 32>}, {pipeline_mode = #tpu.pipeline_mode<synchronous>, transform_indices = @transform_20, window_bounds = array<i64: 1, 32>}, {transform_indices = @transform_21, window_bounds = array<i64: 2, 32>}]} {
    %c0 = arith.constant 0 : index
    %c0_0 = arith.constant 0 : index
    %c0_1 = arith.constant 0 : index
    %0 = vector.load %arg1[%c0, %c0_0, %c0_1] : memref<2x8x32xf32, #tpu.memory_space<vmem>>, vector<2x8x32xf32>
    %c0_2 = arith.constant 0 : index
    %c0_3 = arith.constant 0 : index
    %c0_4 = arith.constant 0 : index
    %1 = vector.load %arg2[%c0_2, %c0_3, %c0_4] : memref<2x1x8xf32, #tpu.memory_space<vmem>>, vector<2x1x8xf32>
    %c0_5 = arith.constant 0 : index
    %c0_6 = arith.constant 0 : index
    %2 = vector.load %arg3[%c0_5, %c0_6] : memref<32x32xf32, #tpu.memory_space<vmem>>, vector<32x32xf32>
    %3 = vector.shape_cast %0 : vector<2x8x32xf32> to vector<16x32xf32>
    %cst = arith.constant dense<0.000000e+00> : vector<16x32xf32>
    %4 = tpu.matmul %3, %2, %cst {dimension_numbers = #tpu.dot_dimension_numbers<[1], [0], [0], [1], [0, 0, 1, 1], [], []>} : vector<16x32xf32>, vector<32x32xf32>, vector<16x32xf32> -> vector<16x32xf32>
    %5 = vector.shape_cast %4 : vector<16x32xf32> to vector<2x8x32xf32>
    %c0_7 = arith.constant 0 : index
    %c0_8 = arith.constant 0 : index
    %6 = vector.load %arg4[%c0_7, %c0_8] : memref<1x32xf32, #tpu.memory_space<vmem>>, vector<1x32xf32>
    %7 = vector.shape_cast %6 : vector<1x32xf32> to vector<1x1x32xf32>
    %8 = vector.broadcast %7 : vector<1x1x32xf32> to vector<2x8x32xf32>
    %9 = arith.addf %5, %8 : vector<2x8x32xf32>
    %c0_9 = arith.constant 0 : index
    %c0_10 = arith.constant 0 : index
    %10 = vector.load %arg5[%c0_9, %c0_10] : memref<32x32xf32, #tpu.memory_space<vmem>>, vector<32x32xf32>
    %11 = vector.shape_cast %0 : vector<2x8x32xf32> to vector<16x32xf32>
    %cst_11 = arith.constant dense<0.000000e+00> : vector<16x32xf32>
    %12 = tpu.matmul %11, %10, %cst_11 {dimension_numbers = #tpu.dot_dimension_numbers<[1], [0], [0], [1], [0, 0, 1, 1], [], []>} : vector<16x32xf32>, vector<32x32xf32>, vector<16x32xf32> -> vector<16x32xf32>
    %13 = vector.shape_cast %12 : vector<16x32xf32> to vector<2x8x32xf32>
    %c0_12 = arith.constant 0 : index
    %c0_13 = arith.constant 0 : index
    %14 = vector.load %arg6[%c0_12, %c0_13] : memref<1x32xf32, #tpu.memory_space<vmem>>, vector<1x32xf32>
    %15 = vector.shape_cast %14 : vector<1x32xf32> to vector<1x1x32xf32>
    %16 = vector.broadcast %15 : vector<1x1x32xf32> to vector<2x8x32xf32>
    %17 = arith.addf %13, %16 : vector<2x8x32xf32>
    %c0_14 = arith.constant 0 : index
    %c0_15 = arith.constant 0 : index
    %18 = vector.load %arg7[%c0_14, %c0_15] : memref<32x32xf32, #tpu.memory_space<vmem>>, vector<32x32xf32>
    %19 = vector.shape_cast %0 : vector<2x8x32xf32> to vector<16x32xf32>
    %cst_16 = arith.constant dense<0.000000e+00> : vector<16x32xf32>
    %20 = tpu.matmul %19, %18, %cst_16 {dimension_numbers = #tpu.dot_dimension_numbers<[1], [0], [0], [1], [0, 0, 1, 1], [], []>} : vector<16x32xf32>, vector<32x32xf32>, vector<16x32xf32> -> vector<16x32xf32>
    %21 = vector.shape_cast %20 : vector<16x32xf32> to vector<2x8x32xf32>
    %c0_17 = arith.constant 0 : index
    %c0_18 = arith.constant 0 : index
    %22 = vector.load %arg8[%c0_17, %c0_18] : memref<1x32xf32, #tpu.memory_space<vmem>>, vector<1x32xf32>
    %23 = vector.shape_cast %22 : vector<1x32xf32> to vector<1x1x32xf32>
    %24 = vector.broadcast %23 : vector<1x1x32xf32> to vector<2x8x32xf32>
    %25 = arith.addf %21, %24 : vector<2x8x32xf32>
    %cst_19 = arith.constant 0.000000e+00 : f32
    %26 = vector.broadcast %cst_19 : f32 to vector<2x8x32xf32>
    %27 = vector.extract_strided_slice %9 {offsets = [0, 0, 0], sizes = [2, 8, 8], strides = [1, 1, 1]} : vector<2x8x32xf32> to vector<2x8x8xf32>
    %28 = vector.extract_strided_slice %17 {offsets = [0, 0, 0], sizes = [2, 8, 8], strides = [1, 1, 1]} : vector<2x8x32xf32> to vector<2x8x8xf32>
    %29 = vector.extract_strided_slice %25 {offsets = [0, 0, 0], sizes = [2, 8, 8], strides = [1, 1, 1]} : vector<2x8x32xf32> to vector<2x8x8xf32>
    "tpu.trace_start"() <{level = 10 : i32, message = "bqd,bkd->bqk"}> : () -> ()
    %cst_20 = arith.constant dense<0.000000e+00> : vector<2x8x8xf32>
    %30 = tpu.matmul %27, %28, %cst_20 {dimension_numbers = #tpu.dot_dimension_numbers<[2], [2], [1], [1], [0, 0, 0, 1, 1, 1], [0], [0]>} : vector<2x8x8xf32>, vector<2x8x8xf32>, vector<2x8x8xf32> -> vector<2x8x8xf32>
    "tpu.trace_stop"() : () -> ()
    %cst_21 = arith.constant 0.353553385 : f32
    %31 = vector.broadcast %cst_21 : f32 to vector<2x8x8xf32>
    %32 = arith.mulf %30, %31 : vector<2x8x8xf32>
    %cst_22 = arith.constant 5.000000e-01 : f32
    %33 = vector.broadcast %cst_22 : f32 to vector<2x1x8xf32>
    %34 = arith.cmpf ogt, %1, %33 : vector<2x1x8xf32>
    %cst_23 = arith.constant -1.000000e+09 : f32
    %35 = vector.shape_cast %34 : vector<2x1x8xi1> to vector<2x1x8xi1>
    %36 = vector.broadcast %35 : vector<2x1x8xi1> to vector<2x8x8xi1>
    %37 = vector.broadcast %cst_23 : f32 to vector<2x8x8xf32>
    %38 = arith.select %36, %32, %37 : vector<2x8x8xi1>, vector<2x8x8xf32>
    %cst_24 = arith.constant dense<0xFF800000> : vector<2x8xf32>
    %39 = vector.multi_reduction <maximumf>, %38, %cst_24 [2] : vector<2x8x8xf32> to vector<2x8xf32>
    %40 = vector.shape_cast %39 : vector<2x8xf32> to vector<2x8x1xf32>
    %41 = vector.broadcast %40 : vector<2x8x1xf32> to vector<2x8x8xf32>
    %42 = arith.subf %38, %41 : vector<2x8x8xf32>
    %43 = math.exp %42 : vector<2x8x8xf32>
    %cst_25 = arith.constant dense<0.000000e+00> : vector<2x8xf32>
    %44 = vector.multi_reduction <add>, %43, %cst_25 [2] : vector<2x8x8xf32> to vector<2x8xf32>
    %45 = vector.shape_cast %44 : vector<2x8xf32> to vector<2x8x1xf32>
    %46 = vector.broadcast %45 : vector<2x8x1xf32> to vector<2x8x8xf32>
    %47 = arith.divf %43, %46 : vector<2x8x8xf32>
    "tpu.trace_start"() <{level = 10 : i32, message = "bqk,bkd->bqd"}> : () -> ()
    %cst_26 = arith.constant dense<0.000000e+00> : vector<2x8x8xf32>
    %48 = tpu.matmul %47, %29, %cst_26 {dimension_numbers = #tpu.dot_dimension_numbers<[2], [1], [1], [2], [0, 0, 0, 1, 1, 2], [0], [0]>} : vector<2x8x8xf32>, vector<2x8x8xf32>, vector<2x8x8xf32> -> vector<2x8x8xf32>
    "tpu.trace_stop"() : () -> ()
    %c0_27 = arith.constant 0 : index
    %c0_28 = arith.constant 0 : index
    %49 = vector.load %arg9[%c0_27, %c0_28] : memref<32x32xf32, #tpu.memory_space<vmem>>, vector<8x32xf32>
    %50 = vector.shape_cast %48 : vector<2x8x8xf32> to vector<16x8xf32>
    %cst_29 = arith.constant dense<0.000000e+00> : vector<16x32xf32>
    %51 = tpu.matmul %50, %49, %cst_29 {dimension_numbers = #tpu.dot_dimension_numbers<[1], [0], [0], [1], [0, 0, 1, 1], [], []>} : vector<16x8xf32>, vector<8x32xf32>, vector<16x32xf32> -> vector<16x32xf32>
    %52 = vector.shape_cast %51 : vector<16x32xf32> to vector<2x8x32xf32>
    %53 = arith.addf %26, %52 : vector<2x8x32xf32>
    %54 = vector.extract_strided_slice %9 {offsets = [0, 0, 8], sizes = [2, 8, 8], strides = [1, 1, 1]} : vector<2x8x32xf32> to vector<2x8x8xf32>
    %55 = vector.extract_strided_slice %17 {offsets = [0, 0, 8], sizes = [2, 8, 8], strides = [1, 1, 1]} : vector<2x8x32xf32> to vector<2x8x8xf32>
    %56 = vector.extract_strided_slice %25 {offsets = [0, 0, 8], sizes = [2, 8, 8], strides = [1, 1, 1]} : vector<2x8x32xf32> to vector<2x8x8xf32>
    "tpu.trace_start"() <{level = 10 : i32, message = "bqd,bkd->bqk"}> : () -> ()
    %cst_30 = arith.constant dense<0.000000e+00> : vector<2x8x8xf32>
    %57 = tpu.matmul %54, %55, %cst_30 {dimension_numbers = #tpu.dot_dimension_numbers<[2], [2], [1], [1], [0, 0, 0, 1, 1, 1], [0], [0]>} : vector<2x8x8xf32>, vector<2x8x8xf32>, vector<2x8x8xf32> -> vector<2x8x8xf32>
    "tpu.trace_stop"() : () -> ()
    %cst_31 = arith.constant 0.353553385 : f32
    %58 = vector.broadcast %cst_31 : f32 to vector<2x8x8xf32>
    %59 = arith.mulf %57, %58 : vector<2x8x8xf32>
    %cst_32 = arith.constant 5.000000e-01 : f32
    %60 = vector.broadcast %cst_32 : f32 to vector<2x1x8xf32>
    %61 = arith.cmpf ogt, %1, %60 : vector<2x1x8xf32>
    %cst_33 = arith.constant -1.000000e+09 : f32
    %62 = vector.shape_cast %61 : vector<2x1x8xi1> to vector<2x1x8xi1>
    %63 = vector.broadcast %62 : vector<2x1x8xi1> to vector<2x8x8xi1>
    %64 = vector.broadcast %cst_33 : f32 to vector<2x8x8xf32>
    %65 = arith.select %63, %59, %64 : vector<2x8x8xi1>, vector<2x8x8xf32>
    %cst_34 = arith.constant dense<0xFF800000> : vector<2x8xf32>
    %66 = vector.multi_reduction <maximumf>, %65, %cst_34 [2] : vector<2x8x8xf32> to vector<2x8xf32>
    %67 = vector.shape_cast %66 : vector<2x8xf32> to vector<2x8x1xf32>
    %68 = vector.broadcast %67 : vector<2x8x1xf32> to vector<2x8x8xf32>
    %69 = arith.subf %65, %68 : vector<2x8x8xf32>
    %70 = math.exp %69 : vector<2x8x8xf32>
    %cst_35 = arith.constant dense<0.000000e+00> : vector<2x8xf32>
    %71 = vector.multi_reduction <add>, %70, %cst_35 [2] : vector<2x8x8xf32> to vector<2x8xf32>
    %72 = vector.shape_cast %71 : vector<2x8xf32> to vector<2x8x1xf32>
    %73 = vector.broadcast %72 : vector<2x8x1xf32> to vector<2x8x8xf32>
    %74 = arith.divf %70, %73 : vector<2x8x8xf32>
    "tpu.trace_start"() <{level = 10 : i32, message = "bqk,bkd->bqd"}> : () -> ()
    %cst_36 = arith.constant dense<0.000000e+00> : vector<2x8x8xf32>
    %75 = tpu.matmul %74, %56, %cst_36 {dimension_numbers = #tpu.dot_dimension_numbers<[2], [1], [1], [2], [0, 0, 0, 1, 1, 2], [0], [0]>} : vector<2x8x8xf32>, vector<2x8x8xf32>, vector<2x8x8xf32> -> vector<2x8x8xf32>
    "tpu.trace_stop"() : () -> ()
    %c8 = arith.constant 8 : index
    %c0_37 = arith.constant 0 : index
    %76 = vector.load %arg9[%c8, %c0_37] : memref<32x32xf32, #tpu.memory_space<vmem>>, vector<8x32xf32>
    %77 = vector.shape_cast %75 : vector<2x8x8xf32> to vector<16x8xf32>
    %cst_38 = arith.constant dense<0.000000e+00> : vector<16x32xf32>
    %78 = tpu.matmul %77, %76, %cst_38 {dimension_numbers = #tpu.dot_dimension_numbers<[1], [0], [0], [1], [0, 0, 1, 1], [], []>} : vector<16x8xf32>, vector<8x32xf32>, vector<16x32xf32> -> vector<16x32xf32>
    %79 = vector.shape_cast %78 : vector<16x32xf32> to vector<2x8x32xf32>
    %80 = arith.addf %53, %79 : vector<2x8x32xf32>
    %81 = vector.extract_strided_slice %9 {offsets = [0, 0, 16], sizes = [2, 8, 8], strides = [1, 1, 1]} : vector<2x8x32xf32> to vector<2x8x8xf32>
    %82 = vector.extract_strided_slice %17 {offsets = [0, 0, 16], sizes = [2, 8, 8], strides = [1, 1, 1]} : vector<2x8x32xf32> to vector<2x8x8xf32>
    %83 = vector.extract_strided_slice %25 {offsets = [0, 0, 16], sizes = [2, 8, 8], strides = [1, 1, 1]} : vector<2x8x32xf32> to vector<2x8x8xf32>
    "tpu.trace_start"() <{level = 10 : i32, message = "bqd,bkd->bqk"}> : () -> ()
    %cst_39 = arith.constant dense<0.000000e+00> : vector<2x8x8xf32>
    %84 = tpu.matmul %81, %82, %cst_39 {dimension_numbers = #tpu.dot_dimension_numbers<[2], [2], [1], [1], [0, 0, 0, 1, 1, 1], [0], [0]>} : vector<2x8x8xf32>, vector<2x8x8xf32>, vector<2x8x8xf32> -> vector<2x8x8xf32>
    "tpu.trace_stop"() : () -> ()
    %cst_40 = arith.constant 0.353553385 : f32
    %85 = vector.broadcast %cst_40 : f32 to vector<2x8x8xf32>
    %86 = arith.mulf %84, %85 : vector<2x8x8xf32>
    %cst_41 = arith.constant 5.000000e-01 : f32
    %87 = vector.broadcast %cst_41 : f32 to vector<2x1x8xf32>
    %88 = arith.cmpf ogt, %1, %87 : vector<2x1x8xf32>
    %cst_42 = arith.constant -1.000000e+09 : f32
    %89 = vector.shape_cast %88 : vector<2x1x8xi1> to vector<2x1x8xi1>
    %90 = vector.broadcast %89 : vector<2x1x8xi1> to vector<2x8x8xi1>
    %91 = vector.broadcast %cst_42 : f32 to vector<2x8x8xf32>
    %92 = arith.select %90, %86, %91 : vector<2x8x8xi1>, vector<2x8x8xf32>
    %cst_43 = arith.constant dense<0xFF800000> : vector<2x8xf32>
    %93 = vector.multi_reduction <maximumf>, %92, %cst_43 [2] : vector<2x8x8xf32> to vector<2x8xf32>
    %94 = vector.shape_cast %93 : vector<2x8xf32> to vector<2x8x1xf32>
    %95 = vector.broadcast %94 : vector<2x8x1xf32> to vector<2x8x8xf32>
    %96 = arith.subf %92, %95 : vector<2x8x8xf32>
    %97 = math.exp %96 : vector<2x8x8xf32>
    %cst_44 = arith.constant dense<0.000000e+00> : vector<2x8xf32>
    %98 = vector.multi_reduction <add>, %97, %cst_44 [2] : vector<2x8x8xf32> to vector<2x8xf32>
    %99 = vector.shape_cast %98 : vector<2x8xf32> to vector<2x8x1xf32>
    %100 = vector.broadcast %99 : vector<2x8x1xf32> to vector<2x8x8xf32>
    %101 = arith.divf %97, %100 : vector<2x8x8xf32>
    "tpu.trace_start"() <{level = 10 : i32, message = "bqk,bkd->bqd"}> : () -> ()
    %cst_45 = arith.constant dense<0.000000e+00> : vector<2x8x8xf32>
    %102 = tpu.matmul %101, %83, %cst_45 {dimension_numbers = #tpu.dot_dimension_numbers<[2], [1], [1], [2], [0, 0, 0, 1, 1, 2], [0], [0]>} : vector<2x8x8xf32>, vector<2x8x8xf32>, vector<2x8x8xf32> -> vector<2x8x8xf32>
    "tpu.trace_stop"() : () -> ()
    %c16 = arith.constant 16 : index
    %c0_46 = arith.constant 0 : index
    %103 = vector.load %arg9[%c16, %c0_46] : memref<32x32xf32, #tpu.memory_space<vmem>>, vector<8x32xf32>
    %104 = vector.shape_cast %102 : vector<2x8x8xf32> to vector<16x8xf32>
    %cst_47 = arith.constant dense<0.000000e+00> : vector<16x32xf32>
    %105 = tpu.matmul %104, %103, %cst_47 {dimension_numbers = #tpu.dot_dimension_numbers<[1], [0], [0], [1], [0, 0, 1, 1], [], []>} : vector<16x8xf32>, vector<8x32xf32>, vector<16x32xf32> -> vector<16x32xf32>
    %106 = vector.shape_cast %105 : vector<16x32xf32> to vector<2x8x32xf32>
    %107 = arith.addf %80, %106 : vector<2x8x32xf32>
    %108 = vector.extract_strided_slice %9 {offsets = [0, 0, 24], sizes = [2, 8, 8], strides = [1, 1, 1]} : vector<2x8x32xf32> to vector<2x8x8xf32>
    %109 = vector.extract_strided_slice %17 {offsets = [0, 0, 24], sizes = [2, 8, 8], strides = [1, 1, 1]} : vector<2x8x32xf32> to vector<2x8x8xf32>
    %110 = vector.extract_strided_slice %25 {offsets = [0, 0, 24], sizes = [2, 8, 8], strides = [1, 1, 1]} : vector<2x8x32xf32> to vector<2x8x8xf32>
    "tpu.trace_start"() <{level = 10 : i32, message = "bqd,bkd->bqk"}> : () -> ()
    %cst_48 = arith.constant dense<0.000000e+00> : vector<2x8x8xf32>
    %111 = tpu.matmul %108, %109, %cst_48 {dimension_numbers = #tpu.dot_dimension_numbers<[2], [2], [1], [1], [0, 0, 0, 1, 1, 1], [0], [0]>} : vector<2x8x8xf32>, vector<2x8x8xf32>, vector<2x8x8xf32> -> vector<2x8x8xf32>
    "tpu.trace_stop"() : () -> ()
    %cst_49 = arith.constant 0.353553385 : f32
    %112 = vector.broadcast %cst_49 : f32 to vector<2x8x8xf32>
    %113 = arith.mulf %111, %112 : vector<2x8x8xf32>
    %cst_50 = arith.constant 5.000000e-01 : f32
    %114 = vector.broadcast %cst_50 : f32 to vector<2x1x8xf32>
    %115 = arith.cmpf ogt, %1, %114 : vector<2x1x8xf32>
    %cst_51 = arith.constant -1.000000e+09 : f32
    %116 = vector.shape_cast %115 : vector<2x1x8xi1> to vector<2x1x8xi1>
    %117 = vector.broadcast %116 : vector<2x1x8xi1> to vector<2x8x8xi1>
    %118 = vector.broadcast %cst_51 : f32 to vector<2x8x8xf32>
    %119 = arith.select %117, %113, %118 : vector<2x8x8xi1>, vector<2x8x8xf32>
    %cst_52 = arith.constant dense<0xFF800000> : vector<2x8xf32>
    %120 = vector.multi_reduction <maximumf>, %119, %cst_52 [2] : vector<2x8x8xf32> to vector<2x8xf32>
    %121 = vector.shape_cast %120 : vector<2x8xf32> to vector<2x8x1xf32>
    %122 = vector.broadcast %121 : vector<2x8x1xf32> to vector<2x8x8xf32>
    %123 = arith.subf %119, %122 : vector<2x8x8xf32>
    %124 = math.exp %123 : vector<2x8x8xf32>
    %cst_53 = arith.constant dense<0.000000e+00> : vector<2x8xf32>
    %125 = vector.multi_reduction <add>, %124, %cst_53 [2] : vector<2x8x8xf32> to vector<2x8xf32>
    %126 = vector.shape_cast %125 : vector<2x8xf32> to vector<2x8x1xf32>
    %127 = vector.broadcast %126 : vector<2x8x1xf32> to vector<2x8x8xf32>
    %128 = arith.divf %124, %127 : vector<2x8x8xf32>
    "tpu.trace_start"() <{level = 10 : i32, message = "bqk,bkd->bqd"}> : () -> ()
    %cst_54 = arith.constant dense<0.000000e+00> : vector<2x8x8xf32>
    %129 = tpu.matmul %128, %110, %cst_54 {dimension_numbers = #tpu.dot_dimension_numbers<[2], [1], [1], [2], [0, 0, 0, 1, 1, 2], [0], [0]>} : vector<2x8x8xf32>, vector<2x8x8xf32>, vector<2x8x8xf32> -> vector<2x8x8xf32>
    "tpu.trace_stop"() : () -> ()
    %c24 = arith.constant 24 : index
    %c0_55 = arith.constant 0 : index
    %130 = vector.load %arg9[%c24, %c0_55] : memref<32x32xf32, #tpu.memory_space<vmem>>, vector<8x32xf32>
    %131 = vector.shape_cast %129 : vector<2x8x8xf32> to vector<16x8xf32>
    %cst_56 = arith.constant dense<0.000000e+00> : vector<16x32xf32>
    %132 = tpu.matmul %131, %130, %cst_56 {dimension_numbers = #tpu.dot_dimension_numbers<[1], [0], [0], [1], [0, 0, 1, 1], [], []>} : vector<16x8xf32>, vector<8x32xf32>, vector<16x32xf32> -> vector<16x32xf32>
    %133 = vector.shape_cast %132 : vector<16x32xf32> to vector<2x8x32xf32>
    %134 = arith.addf %107, %133 : vector<2x8x32xf32>
    %c0_57 = arith.constant 0 : index
    %c0_58 = arith.constant 0 : index
    %135 = vector.load %arg10[%c0_57, %c0_58] : memref<1x32xf32, #tpu.memory_space<vmem>>, vector<1x32xf32>
    %136 = vector.shape_cast %135 : vector<1x32xf32> to vector<1x1x32xf32>
    %137 = vector.broadcast %136 : vector<1x1x32xf32> to vector<2x8x32xf32>
    %138 = arith.addf %134, %137 : vector<2x8x32xf32>
    %139 = arith.addf %0, %138 : vector<2x8x32xf32>
    %c0_59 = arith.constant 0 : index
    %c0_60 = arith.constant 0 : index
    %140 = vector.load %arg11[%c0_59, %c0_60] : memref<1x32xf32, #tpu.memory_space<vmem>>, vector<1x32xf32>
    %c0_61 = arith.constant 0 : index
    %c0_62 = arith.constant 0 : index
    %141 = vector.load %arg12[%c0_61, %c0_62] : memref<1x32xf32, #tpu.memory_space<vmem>>, vector<1x32xf32>
    %cst_63 = arith.constant dense<0.000000e+00> : vector<2x8xf32>
    %142 = vector.multi_reduction <add>, %139, %cst_63 [2] : vector<2x8x32xf32> to vector<2x8xf32>
    %143 = vector.shape_cast %142 : vector<2x8xf32> to vector<2x8x1xf32>
    %cst_64 = arith.constant 3.200000e+01 : f32
    %144 = vector.broadcast %cst_64 : f32 to vector<2x8x1xf32>
    %145 = arith.divf %143, %144 : vector<2x8x1xf32>
    %146 = vector.broadcast %145 : vector<2x8x1xf32> to vector<2x8x32xf32>
    %147 = arith.subf %139, %146 : vector<2x8x32xf32>
    %148 = arith.mulf %147, %147 : vector<2x8x32xf32>
    %cst_65 = arith.constant dense<0.000000e+00> : vector<2x8xf32>
    %149 = vector.multi_reduction <add>, %148, %cst_65 [2] : vector<2x8x32xf32> to vector<2x8xf32>
    %150 = vector.shape_cast %149 : vector<2x8xf32> to vector<2x8x1xf32>
    %cst_66 = arith.constant 3.200000e+01 : f32
    %151 = vector.broadcast %cst_66 : f32 to vector<2x8x1xf32>
    %152 = arith.divf %150, %151 : vector<2x8x1xf32>
    %153 = vector.broadcast %145 : vector<2x8x1xf32> to vector<2x8x32xf32>
    %154 = arith.subf %139, %153 : vector<2x8x32xf32>
    %cst_67 = arith.constant 9.99999974E-6 : f32
    %155 = vector.broadcast %cst_67 : f32 to vector<2x8x1xf32>
    %156 = arith.addf %152, %155 : vector<2x8x1xf32>
    %157 = math.rsqrt %156 : vector<2x8x1xf32>
    %158 = vector.broadcast %157 : vector<2x8x1xf32> to vector<2x8x32xf32>
    %159 = arith.mulf %154, %158 : vector<2x8x32xf32>
    %160 = vector.shape_cast %140 : vector<1x32xf32> to vector<1x1x32xf32>
    %161 = vector.broadcast %160 : vector<1x1x32xf32> to vector<2x8x32xf32>
    %162 = arith.mulf %159, %161 : vector<2x8x32xf32>
    %163 = vector.shape_cast %141 : vector<1x32xf32> to vector<1x1x32xf32>
    %164 = vector.broadcast %163 : vector<1x1x32xf32> to vector<2x8x32xf32>
    %165 = arith.addf %162, %164 : vector<2x8x32xf32>
    %c0_68 = arith.constant 0 : index
    %c0_69 = arith.constant 0 : index
    %166 = vector.load %arg13[%c0_68, %c0_69] : memref<32x32xf32, #tpu.memory_space<vmem>>, vector<32x32xf32>
    %167 = vector.shape_cast %165 : vector<2x8x32xf32> to vector<16x32xf32>
    %cst_70 = arith.constant dense<0.000000e+00> : vector<16x32xf32>
    %168 = tpu.matmul %167, %166, %cst_70 {dimension_numbers = #tpu.dot_dimension_numbers<[1], [0], [0], [1], [0, 0, 1, 1], [], []>} : vector<16x32xf32>, vector<32x32xf32>, vector<16x32xf32> -> vector<16x32xf32>
    %169 = vector.shape_cast %168 : vector<16x32xf32> to vector<2x8x32xf32>
    %c0_71 = arith.constant 0 : index
    %c0_72 = arith.constant 0 : index
    %170 = vector.load %arg14[%c0_71, %c0_72] : memref<1x32xf32, #tpu.memory_space<vmem>>, vector<1x32xf32>
    %171 = vector.shape_cast %170 : vector<1x32xf32> to vector<1x1x32xf32>
    %172 = vector.broadcast %171 : vector<1x1x32xf32> to vector<2x8x32xf32>
    %173 = arith.addf %169, %172 : vector<2x8x32xf32>
    %cst_73 = arith.constant 0.000000e+00 : f32
    %174 = vector.broadcast %cst_73 : f32 to vector<2x8x32xf32>
    %175 = arith.maximumf %173, %174 : vector<2x8x32xf32>
    %c0_74 = arith.constant 0 : index
    %c0_75 = arith.constant 0 : index
    %176 = vector.load %arg15[%c0_74, %c0_75] : memref<32x32xf32, #tpu.memory_space<vmem>>, vector<32x32xf32>
    %177 = vector.shape_cast %175 : vector<2x8x32xf32> to vector<16x32xf32>
    %cst_76 = arith.constant dense<0.000000e+00> : vector<16x32xf32>
    %178 = tpu.matmul %177, %176, %cst_76 {dimension_numbers = #tpu.dot_dimension_numbers<[1], [0], [0], [1], [0, 0, 1, 1], [], []>} : vector<16x32xf32>, vector<32x32xf32>, vector<16x32xf32> -> vector<16x32xf32>
    %179 = vector.shape_cast %178 : vector<16x32xf32> to vector<2x8x32xf32>
    %c0_77 = arith.constant 0 : index
    %c0_78 = arith.constant 0 : index
    %180 = vector.load %arg16[%c0_77, %c0_78] : memref<1x32xf32, #tpu.memory_space<vmem>>, vector<1x32xf32>
    %181 = vector.shape_cast %180 : vector<1x32xf32> to vector<1x1x32xf32>
    %182 = vector.broadcast %181 : vector<1x1x32xf32> to vector<2x8x32xf32>
    %183 = arith.addf %179, %182 : vector<2x8x32xf32>
    %184 = arith.addf %165, %183 : vector<2x8x32xf32>
    %c0_79 = arith.constant 0 : index
    %c0_80 = arith.constant 0 : index
    %185 = vector.load %arg17[%c0_79, %c0_80] : memref<1x32xf32, #tpu.memory_space<vmem>>, vector<1x32xf32>
    %c0_81 = arith.constant 0 : index
    %c0_82 = arith.constant 0 : index
    %186 = vector.load %arg18[%c0_81, %c0_82] : memref<1x32xf32, #tpu.memory_space<vmem>>, vector<1x32xf32>
    %cst_83 = arith.constant dense<0.000000e+00> : vector<2x8xf32>
    %187 = vector.multi_reduction <add>, %184, %cst_83 [2] : vector<2x8x32xf32> to vector<2x8xf32>
    %188 = vector.shape_cast %187 : vector<2x8xf32> to vector<2x8x1xf32>
    %cst_84 = arith.constant 3.200000e+01 : f32
    %189 = vector.broadcast %cst_84 : f32 to vector<2x8x1xf32>
    %190 = arith.divf %188, %189 : vector<2x8x1xf32>
    %191 = vector.broadcast %190 : vector<2x8x1xf32> to vector<2x8x32xf32>
    %192 = arith.subf %184, %191 : vector<2x8x32xf32>
    %193 = arith.mulf %192, %192 : vector<2x8x32xf32>
    %cst_85 = arith.constant dense<0.000000e+00> : vector<2x8xf32>
    %194 = vector.multi_reduction <add>, %193, %cst_85 [2] : vector<2x8x32xf32> to vector<2x8xf32>
    %195 = vector.shape_cast %194 : vector<2x8xf32> to vector<2x8x1xf32>
    %cst_86 = arith.constant 3.200000e+01 : f32
    %196 = vector.broadcast %cst_86 : f32 to vector<2x8x1xf32>
    %197 = arith.divf %195, %196 : vector<2x8x1xf32>
    %198 = vector.broadcast %190 : vector<2x8x1xf32> to vector<2x8x32xf32>
    %199 = arith.subf %184, %198 : vector<2x8x32xf32>
    %cst_87 = arith.constant 9.99999974E-6 : f32
    %200 = vector.broadcast %cst_87 : f32 to vector<2x8x1xf32>
    %201 = arith.addf %197, %200 : vector<2x8x1xf32>
    %202 = math.rsqrt %201 : vector<2x8x1xf32>
    %203 = vector.broadcast %202 : vector<2x8x1xf32> to vector<2x8x32xf32>
    %204 = arith.mulf %199, %203 : vector<2x8x32xf32>
    %205 = vector.shape_cast %185 : vector<1x32xf32> to vector<1x1x32xf32>
    %206 = vector.broadcast %205 : vector<1x1x32xf32> to vector<2x8x32xf32>
    %207 = arith.mulf %204, %206 : vector<2x8x32xf32>
    %208 = vector.shape_cast %186 : vector<1x32xf32> to vector<1x1x32xf32>
    %209 = vector.broadcast %208 : vector<1x1x32xf32> to vector<2x8x32xf32>
    %210 = arith.addf %207, %209 : vector<2x8x32xf32>
    %c0_88 = arith.constant 0 : index
    %c0_89 = arith.constant 0 : index
    %211 = vector.load %arg19[%c0_88, %c0_89] : memref<32x32xf32, #tpu.memory_space<vmem>>, vector<32x32xf32>
    %212 = vector.shape_cast %210 : vector<2x8x32xf32> to vector<16x32xf32>
    %cst_90 = arith.constant dense<0.000000e+00> : vector<16x32xf32>
    %213 = tpu.matmul %212, %211, %cst_90 {dimension_numbers = #tpu.dot_dimension_numbers<[1], [0], [0], [1], [0, 0, 1, 1], [], []>} : vector<16x32xf32>, vector<32x32xf32>, vector<16x32xf32> -> vector<16x32xf32>
    %214 = vector.shape_cast %213 : vector<16x32xf32> to vector<2x8x32xf32>
    %c0_91 = arith.constant 0 : index
    %c0_92 = arith.constant 0 : index
    %215 = vector.load %arg20[%c0_91, %c0_92] : memref<1x32xf32, #tpu.memory_space<vmem>>, vector<1x32xf32>
    %216 = vector.shape_cast %215 : vector<1x32xf32> to vector<1x1x32xf32>
    %217 = vector.broadcast %216 : vector<1x1x32xf32> to vector<2x8x32xf32>
    %218 = arith.addf %214, %217 : vector<2x8x32xf32>
    %219 = math.tanh %218 : vector<2x8x32xf32>
    %c0_93 = arith.constant 0 : index
    %c0_94 = arith.constant 0 : index
    %220 = vector.load %arg21[%c0_93, %c0_94] : memref<1x32xf32, #tpu.memory_space<vmem>>, vector<1x32xf32>
    %221 = vector.shape_cast %220 : vector<1x32xf32> to vector<1x1x32xf32>
    %222 = vector.broadcast %221 : vector<1x1x32xf32> to vector<2x1x32xf32>
    "tpu.trace_start"() <{level = 10 : i32, message = "bqh,bsh->bqs"}> : () -> ()
    %cst_95 = arith.constant dense<0.000000e+00> : vector<2x1x8xf32>
    %223 = tpu.matmul %222, %219, %cst_95 {dimension_numbers = #tpu.dot_dimension_numbers<[2], [2], [1], [1], [0, 0, 0, 1, 1, 1], [0], [0]>} : vector<2x1x32xf32>, vector<2x8x32xf32>, vector<2x1x8xf32> -> vector<2x1x8xf32>
    "tpu.trace_stop"() : () -> ()
    %cst_96 = arith.constant 0.176776692 : f32
    %224 = vector.broadcast %cst_96 : f32 to vector<2x1x8xf32>
    %225 = arith.mulf %223, %224 : vector<2x1x8xf32>
    %cst_97 = arith.constant 5.000000e-01 : f32
    %226 = vector.broadcast %cst_97 : f32 to vector<2x1x8xf32>
    %227 = arith.cmpf ogt, %1, %226 : vector<2x1x8xf32>
    %cst_98 = arith.constant -1.000000e+09 : f32
    %228 = vector.broadcast %cst_98 : f32 to vector<2x1x8xf32>
    %229 = arith.select %227, %225, %228 : vector<2x1x8xi1>, vector<2x1x8xf32>
    %cst_99 = arith.constant dense<0xFF800000> : vector<2x1xf32>
    %230 = vector.multi_reduction <maximumf>, %229, %cst_99 [2] : vector<2x1x8xf32> to vector<2x1xf32>
    %231 = vector.shape_cast %230 : vector<2x1xf32> to vector<2x1x1xf32>
    %232 = vector.broadcast %231 : vector<2x1x1xf32> to vector<2x1x8xf32>
    %233 = arith.subf %229, %232 : vector<2x1x8xf32>
    %234 = math.exp %233 : vector<2x1x8xf32>
    %cst_100 = arith.constant dense<0.000000e+00> : vector<2x1xf32>
    %235 = vector.multi_reduction <add>, %234, %cst_100 [2] : vector<2x1x8xf32> to vector<2x1xf32>
    %236 = vector.shape_cast %235 : vector<2x1xf32> to vector<2x1x1xf32>
    %237 = vector.broadcast %236 : vector<2x1x1xf32> to vector<2x1x8xf32>
    %238 = arith.divf %234, %237 : vector<2x1x8xf32>
    "tpu.trace_start"() <{level = 10 : i32, message = "bqs,bsh->bqh"}> : () -> ()
    %cst_101 = arith.constant dense<0.000000e+00> : vector<2x1x32xf32>
    %239 = tpu.matmul %238, %210, %cst_101 {dimension_numbers = #tpu.dot_dimension_numbers<[2], [1], [1], [2], [0, 0, 0, 1, 1, 2], [0], [0]>} : vector<2x1x8xf32>, vector<2x8x32xf32>, vector<2x1x32xf32> -> vector<2x1x32xf32>
    "tpu.trace_stop"() : () -> ()
    %240 = vector.shape_cast %239 : vector<2x1x32xf32> to vector<2x32xf32>
    %c0_102 = arith.constant 0 : index
    %c0_103 = arith.constant 0 : index
    %241 = vector.load %arg22[%c0_102, %c0_103] : memref<2x32xf32, #tpu.memory_space<vmem>>, vector<2x32xf32>
    tpu.vector_store %arg22[%c0_102, %c0_103], %240 {strides = array<i32>} : memref<2x32xf32, #tpu.memory_space<vmem>>, vector<2x32xf32>,
    return
  }
  func.func @transform_0(%arg0: i32) -> (i32, i32, i32) {
    %c0_i32 = arith.constant 0 : i32
    %c0_i32_0 = arith.constant 0 : i32
    %c0_i32_1 = arith.constant 0 : i32
    return %arg0, %c0_i32, %c0_i32_0 : i32, i32, i32
  }
  func.func @transform_1(%arg0: i32) -> (i32, i32, i32) {
    %c0_i32 = arith.constant 0 : i32
    %c0_i32_0 = arith.constant 0 : i32
    %c0_i32_1 = arith.constant 0 : i32
    return %arg0, %c0_i32, %c0_i32_0 : i32, i32, i32
  }
  func.func @transform_2(%arg0: i32) -> (i32, i32) {
    %c0_i32 = arith.constant 0 : i32
    %c0_i32_0 = arith.constant 0 : i32
    %c0_i32_1 = arith.constant 0 : i32
    return %c0_i32, %c0_i32_0 : i32, i32
  }
  func.func @transform_3(%arg0: i32) -> (i32, i32) {
    %c0_i32 = arith.constant 0 : i32
    %c0_i32_0 = arith.constant 0 : i32
    %c0_i32_1 = arith.constant 0 : i32
    return %c0_i32, %c0_i32_0 : i32, i32
  }
  func.func @transform_4(%arg0: i32) -> (i32, i32) {
    %c0_i32 = arith.constant 0 : i32
    %c0_i32_0 = arith.constant 0 : i32
    %c0_i32_1 = arith.constant 0 : i32
    return %c0_i32, %c0_i32_0 : i32, i32
  }
  func.func @transform_5(%arg0: i32) -> (i32, i32) {
    %c0_i32 = arith.constant 0 : i32
    %c0_i32_0 = arith.constant 0 : i32
    %c0_i32_1 = arith.constant 0 : i32
    return %c0_i32, %c0_i32_0 : i32, i32
  }
  func.func @transform_6(%arg0: i32) -> (i32, i32) {
    %c0_i32 = arith.constant 0 : i32
    %c0_i32_0 = arith.constant 0 : i32
    %c0_i32_1 = arith.constant 0 : i32
    return %c0_i32, %c0_i32_0 : i32, i32
  }
  func.func @transform_7(%arg0: i32) -> (i32, i32) {
    %c0_i32 = arith.constant 0 : i32
    %c0_i32_0 = arith.constant 0 : i32
    %c0_i32_1 = arith.constant 0 : i32
    return %c0_i32, %c0_i32_0 : i32, i32
  }
  func.func @transform_8(%arg0: i32) -> (i32, i32) {
    %c0_i32 = arith.constant 0 : i32
    %c0_i32_0 = arith.constant 0 : i32
    %c0_i32_1 = arith.constant 0 : i32
    return %c0_i32, %c0_i32_0 : i32, i32
  }
  func.func @transform_9(%arg0: i32) -> (i32, i32) {
    %c0_i32 = arith.constant 0 : i32
    %c0_i32_0 = arith.constant 0 : i32
    %c0_i32_1 = arith.constant 0 : i32
    return %c0_i32, %c0_i32_0 : i32, i32
  }
  func.func @transform_10(%arg0: i32) -> (i32, i32) {
    %c0_i32 = arith.constant 0 : i32
    %c0_i32_0 = arith.constant 0 : i32
    %c0_i32_1 = arith.constant 0 : i32
    return %c0_i32, %c0_i32_0 : i32, i32
  }
  func.func @transform_11(%arg0: i32) -> (i32, i32) {
    %c0_i32 = arith.constant 0 : i32
    %c0_i32_0 = arith.constant 0 : i32
    %c0_i32_1 = arith.constant 0 : i32
    return %c0_i32, %c0_i32_0 : i32, i32
  }
  func.func @transform_12(%arg0: i32) -> (i32, i32) {
    %c0_i32 = arith.constant 0 : i32
    %c0_i32_0 = arith.constant 0 : i32
    %c0_i32_1 = arith.constant 0 : i32
    return %c0_i32, %c0_i32_0 : i32, i32
  }
  func.func @transform_13(%arg0: i32) -> (i32, i32) {
    %c0_i32 = arith.constant 0 : i32
    %c0_i32_0 = arith.constant 0 : i32
    %c0_i32_1 = arith.constant 0 : i32
    return %c0_i32, %c0_i32_0 : i32, i32
  }
  func.func @transform_14(%arg0: i32) -> (i32, i32) {
    %c0_i32 = arith.constant 0 : i32
    %c0_i32_0 = arith.constant 0 : i32
    %c0_i32_1 = arith.constant 0 : i32
    return %c0_i32, %c0_i32_0 : i32, i32
  }
  func.func @transform_15(%arg0: i32) -> (i32, i32) {
    %c0_i32 = arith.constant 0 : i32
    %c0_i32_0 = arith.constant 0 : i32
    %c0_i32_1 = arith.constant 0 : i32
    return %c0_i32, %c0_i32_0 : i32, i32
  }
  func.func @transform_16(%arg0: i32) -> (i32, i32) {
    %c0_i32 = arith.constant 0 : i32
    %c0_i32_0 = arith.constant 0 : i32
    %c0_i32_1 = arith.constant 0 : i32
    return %c0_i32, %c0_i32_0 : i32, i32
  }
  func.func @transform_17(%arg0: i32) -> (i32, i32) {
    %c0_i32 = arith.constant 0 : i32
    %c0_i32_0 = arith.constant 0 : i32
    %c0_i32_1 = arith.constant 0 : i32
    return %c0_i32, %c0_i32_0 : i32, i32
  }
  func.func @transform_18(%arg0: i32) -> (i32, i32) {
    %c0_i32 = arith.constant 0 : i32
    %c0_i32_0 = arith.constant 0 : i32
    %c0_i32_1 = arith.constant 0 : i32
    return %c0_i32, %c0_i32_0 : i32, i32
  }
  func.func @transform_19(%arg0: i32) -> (i32, i32) {
    %c0_i32 = arith.constant 0 : i32
    %c0_i32_0 = arith.constant 0 : i32
    %c0_i32_1 = arith.constant 0 : i32
    return %c0_i32, %c0_i32_0 : i32, i32
  }
  func.func @transform_20(%arg0: i32) -> (i32, i32) {
    %c0_i32 = arith.constant 0 : i32
    %c0_i32_0 = arith.constant 0 : i32
    %c0_i32_1 = arith.constant 0 : i32
    return %c0_i32, %c0_i32_0 : i32, i32
  }
  func.func @transform_21(%arg0: i32) -> (i32, i32) {
    %c0_i32 = arith.constant 0 : i32
    %c0_i32_0 = arith.constant 0 : i32
    return %arg0, %c0_i32 : i32, i32
  }
}

</mosaic_0001>

<bundles_post_ra>
// kernel: tpu_custom_call.1
= control target key start
LH: loop header
LB: loop body
LE: loop exit
PB: predicated region body
PF: predicated region fallthrough
CT: control target
= control target key end

     0   :  { %s4295_s0 = inlined_call_operand.hbm [shape: f32[2,8,32], index: 0, kind: input, shape index: {}]   ;;  %s4296_s1 = inlined_call_operand.hbm [shape: f32[2,1,8], index: 1, kind: input, shape index: {}]   ;;  %s4297_s2 = inlined_call_operand.hbm [shape: f32[32,32], index: 2, kind: input, shape index: {}]   ;;  %s4298_s3 = inlined_call_operand.hbm [shape: f32[1,32], index: 3, kind: input, shape index: {}]   ;;  %s4299_s4 = inlined_call_operand.hbm [shape: f32[32,32], index: 4, kind: input, shape index: {}]   ;;  %s4300_s5 = inlined_call_operand.hbm [shape: f32[1,32], index: 5, kind: input, shape index: {}]   ;;  %s4301_s6 = inlined_call_operand.hbm [shape: f32[32,32], index: 6, kind: input, shape index: {}]   ;;  %s4302_s7 = inlined_call_operand.hbm [shape: f32[1,32], index: 7, kind: input, shape index: {}]   ;;  %s4303_s8 = inlined_call_operand.hbm [shape: f32[32,32], index: 8, kind: input, shape index: {}]   ;;  %s4304_s9 = inlined_call_operand.hbm [shape: f32[1,32], index: 9, kind: input, shape index: {}]   ;;  %s4305_s10 = inlined_call_operand.hbm [shape: f32[1,32], index: 10, kind: input, shape index: {}]   ;;  %s4306_s11 = inlined_call_operand.hbm [shape: f32[1,32], index: 11, kind: input, shape index: {}]   ;;  %s4307_s12 = inlined_call_operand.hbm [shape: f32[32,32], index: 12, kind: input, shape index: {}]   ;;  %s4308_s13 = inlined_call_operand.hbm [shape: f32[1,32], index: 13, kind: input, shape index: {}]   ;;  %s4309_s14 = inlined_call_operand.hbm [shape: f32[32,32], index: 14, kind: input, shape index: {}]   ;;  %s4310_s15 = inlined_call_operand.hbm [shape: f32[1,32], index: 15, kind: input, shape index: {}]   ;;  %s4311_s16 = inlined_call_operand.hbm [shape: f32[1,32], index: 16, kind: input, shape index: {}]   ;;  %s4312_s17 = inlined_call_operand.hbm [shape: f32[1,32], index: 17, kind: input, shape index: {}]   ;;  %s4313_s18 = inlined_call_operand.vmem [shape: f32[32,32], index: 18, kind: input, shape index: {}]   ;;  %s4314_s19 = inlined_call_operand.vmem [shape: f32[1,32], index: 19, kind: input, shape index: {}]   ;;  %s4315_s20 = inlined_call_operand.vmem [shape: f32[1,32], index: 20, kind: input, shape index: {}]   ;;  %s4316_s21 = inlined_call_operand.hbm [shape: f32[2,32], index: 21, kind: output, shape index: {}]  }
   0x1   :  { %4317 = sst [smem:[#allocation43_spill]] %s4295_s0 }
   0x2   :  { %4318 = sst [smem:[#allocation44_spill]] %s4296_s1 }
   0x3   :  { %4319 = sst [smem:[#allocation45_spill]] %s4297_s2 }
   0x4   :  { %4320 = sst [smem:[#allocation46_spill]] %s4298_s3 }
   0x5   :  { %4321 = sst [smem:[#allocation47_spill]] %s4299_s4 }
   0x6   :  { %4322 = sst [smem:[#allocation48_spill]] %s4300_s5 }
   0x7   :  { %26 = vsyncpa [#allocation3], 0 }
   0x8   :  { %27 = vsyncpa [#allocation6], 0 }
   0x9   :  { %28 = vsyncpa [#allocation9], 0 }
   0xa   :  { %29 = vsyncpa [#allocation12], 0 }
   0xb   :  { %30 = vsyncpa [#allocation15], 0 }
   0xc   :  { %31 = vsyncpa [#allocation18], 0 }
   0xd   :  { %32 = vsyncpa [#allocation21], 0 }
   0xe   :  { %33 = vsyncpa [#allocation24], 0 }
   0xf   :  { %34 = vsyncpa [#allocation27], 0 }
  0x10   :  { %35 = vsyncpa [#allocation30], 0 }
  0x11   :  { %36 = vsyncpa [#allocation4], 0  ;;  %s3808_s2 = smov [#allocation5]  }
  0x12   :  { %s54_s25 = sshll.u32 %s3808_s2, 4  ;;  %s55_s25 = int_to_ptr.vmem [resolvable:$true] %s54_s25 }
  0x13   :  { %s3414_s26 = scalar_lea.vmem %s55_s25, 32  ;;  %p3419_p1 = scmp.lt.s32.totalorder %s55_s25, %s55_s25 }
  0x14   :  { %p3415_p0 = scmp.ne.s32.totalorder %s55_s25, %s3414_s26  ;;  %p3420_p2 = scmp.lt.s32.totalorder %s3414_s26, %s3414_s26 }
  0x16   :  { %p3421_p3 = por %p3420_p2, %p3419_p1 }
  0x18   :  { %p3422_p4 = pnand %p3421_p3, %p3415_p0 }
  0x1a   :  { %3425 = shalt.err (!%p3422_p4)
}
  0x1b   :  { %s3809_s27 = smov 16   ;;  %s3810_s3 = smov 1  }
  0x1c   :  { %s4323_s0 = sld [smem:[#allocation44_spill]]  ;;  %s3811_s4 = smov [#allocation8]  }
  0x1d   :  { %s79_s30 = sshll.u32 %s3811_s4, 4  ;;  %s3812_s5 = smov [#allocation11]   ;;  %s80_s30 = int_to_ptr.vmem [resolvable:$true] %s79_s30 }
  0x1e   :  { %s101_s22 = sshll.u32 %s3812_s5, 4  ;;  %s3434_s23 = scalar_lea.vmem %s80_s30, 16  ;;  %s102_s22 = int_to_ptr.vmem [resolvable:$true] %s101_s22 }
  0x1f   :  { %p3435_p5 = scmp.ne.s32.totalorder %s80_s30, %s3434_s23  ;;  %s3438_s1 = scalar_lea.vmem %s80_s30, 32 }
  0x20   :  { %p3439_p6 = scmp.lt.s32.totalorder %s80_s30, %s80_s30  ;;  %p3440_p7 = scmp.lt.s32.totalorder %s3438_s1, %s3434_s23 }
  0x22   :  { %60 = dma.hbm_to_vmem [thread:$0]  %s4323_s0, 32, %s55_s25, [#allocation6], %s3809_s27, %s3809_s27, %s3810_s3  }
  0x23   :  { %p3441_p8 = por %p3440_p7, %p3439_p6 }
  0x25   :  { %p3442_p9 = pnand %p3441_p8, %p3435_p5 }
  0x27   :  { %3445 = shalt.err (!%p3442_p9)
}
  0x28   :  { %s4324_s26 = sld [smem:[#allocation46_spill]]  ;;  %s3454_s28 = scalar_lea.vmem %s102_s22, 16 }
  0x29   :  { %p3455_p10 = scmp.ne.s32.totalorder %s102_s22, %s3454_s28  ;;  %s3458_s25 = scalar_lea.vmem %s102_s22, 32 }
  0x2a   :  { %p3459_p11 = scmp.lt.s32.totalorder %s102_s22, %s102_s22  ;;  %p3460_p12 = scmp.lt.s32.totalorder %s3458_s25, %s3454_s28 }
  0x2c   :  { %p3461_p13 = por %p3460_p12, %p3459_p11 }
  0x2e   :  { %82 = dma.hbm_to_vmem [thread:$0]  %s4324_s26, 16, %s80_s30, [#allocation9]  }
  0x2f   :  { %p3462_p0 = pnand %p3461_p13, %p3455_p10 }
  0x31   :  { %3465 = shalt.err (!%p3462_p0)
}
  0x32   :  { %s4325_s29 = sld [smem:[#allocation48_spill]]  ;;  %s3813_s0 = smov [#allocation14]  }
  0x33   :  { %s123_s4 = sshll.u32 %s3813_s0, 4  ;;  %s3814_s5 = smov [#allocation17]   ;;  %s124_s4 = int_to_ptr.vmem [resolvable:$true] %s123_s4 }
  0x34   :  { %s145_s23 = sshll.u32 %s3814_s5, 4  ;;  %s3474_s1 = scalar_lea.vmem %s124_s4, 16  ;;  %s146_s23 = int_to_ptr.vmem [resolvable:$true] %s145_s23 }
  0x35   :  { %p3475_p1 = scmp.ne.s32.totalorder %s124_s4, %s3474_s1  ;;  %s3478_s30 = scalar_lea.vmem %s124_s4, 32 }
  0x36   :  { %p3479_p2 = scmp.lt.s32.totalorder %s124_s4, %s124_s4  ;;  %p3480_p3 = scmp.lt.s32.totalorder %s3478_s30, %s3474_s1 }
  0x38   :  { %104 = dma.hbm_to_vmem [thread:$0]  %s4325_s29, 16, %s102_s22, [#allocation12]  }
  0x39   :  { %p3481_p4 = por %p3480_p3, %p3479_p2 }
  0x3b   :  { %p3482_p5 = pnand %p3481_p4, %p3475_p1 }
  0x3d   :  { %3485 = shalt.err (!%p3482_p5)
}
  0x3e   :  { %126 = dma.hbm_to_vmem [thread:$0]  %s4302_s7, 16, %s124_s4, [#allocation15]  }
  0x3f   :  { %s3494_s26 = scalar_lea.vmem %s146_s23, 16  ;;  %s3498_s22 = scalar_lea.vmem %s146_s23, 32 }
  0x40   :  { %p3495_p6 = scmp.ne.s32.totalorder %s146_s23, %s3494_s26  ;;  %p3499_p7 = scmp.lt.s32.totalorder %s146_s23, %s146_s23 }
  0x41   :  { %p3500_p8 = scmp.lt.s32.totalorder %s3498_s22, %s3494_s26 }
  0x43   :  { %p3501_p9 = por %p3500_p8, %p3499_p7 }
  0x45   :  { %p3502_p10 = pnand %p3501_p9, %p3495_p6 }
  0x47   :  { %3505 = shalt.err (!%p3502_p10)
}
  0x48   :  { %148 = dma.hbm_to_vmem [thread:$0]  %s4304_s9, 16, %s146_s23, [#allocation18]  }
  0x49   :  { %s3815_s27 = smov [#allocation20]   ;;  %s3816_s29 = smov [#allocation23]  }
  0x4a   :  { %s165_s3 = sshll.u32 %s3815_s27, 4  ;;  %s187_s0 = sshll.u32 %s3816_s29, 4  ;;  %s166_s3 = int_to_ptr.vmem [resolvable:$true] %s165_s3  ;;  %s188_s0 = int_to_ptr.vmem [resolvable:$true] %s187_s0 }
  0x4b   :  { %s3514_s5 = scalar_lea.vmem %s166_s3, 16  ;;  %s3518_s7 = scalar_lea.vmem %s166_s3, 32 }
  0x4c   :  { %p3515_p11 = scmp.ne.s32.totalorder %s166_s3, %s3514_s5  ;;  %p3519_p12 = scmp.lt.s32.totalorder %s166_s3, %s166_s3 }
  0x4d   :  { %p3520_p13 = scmp.lt.s32.totalorder %s3518_s7, %s3514_s5 }
  0x4f   :  { %p3521_p0 = por %p3520_p13, %p3519_p12 }
  0x51   :  { %p3522_p1 = pnand %p3521_p0, %p3515_p11 }
  0x53   :  { %3525 = shalt.err (!%p3522_p1)
}
  0x54   :  { %168 = dma.hbm_to_vmem [thread:$0]  %s4306_s11, 16, %s166_s3, [#allocation21]  }
  0x55   :  { %s3534_s30 = scalar_lea.vmem %s188_s0, 16  ;;  %s3538_s9 = scalar_lea.vmem %s188_s0, 32 }
  0x56   :  { %p3535_p2 = scmp.ne.s32.totalorder %s188_s0, %s3534_s30  ;;  %p3539_p3 = scmp.lt.s32.totalorder %s188_s0, %s188_s0 }
  0x57   :  { %p3540_p4 = scmp.lt.s32.totalorder %s3538_s9, %s3534_s30 }
  0x59   :  { %p3541_p5 = por %p3540_p4, %p3539_p3 }
  0x5b   :  { %p3542_p6 = pnand %p3541_p5, %p3535_p2 }
  0x5d   :  { %3545 = shalt.err (!%p3542_p6)
}
  0x5e   :  { %190 = dma.hbm_to_vmem [thread:$0]  %s4308_s13, 16, %s188_s0, [#allocation24]  }
  0x5f   :  { %s3817_s2 = smov [#allocation26]   ;;  %s3818_s22 = smov [#allocation2]  }
  0x60   :  { %s209_s26 = sshll.u32 %s3817_s2, 4  ;;  %s42_s28 = sshll.u32 %s3818_s22, 4  ;;  %s210_s26 = int_to_ptr.vmem [resolvable:$true] %s209_s26  ;;  %s43_s28 = int_to_ptr.vmem [resolvable:$true] %s42_s28 }
  0x61   :  { %s3554_s25 = scalar_lea.vmem %s210_s26, 16  ;;  %s3558_s11 = scalar_lea.vmem %s210_s26, 32 }
  0x62   :  { %p3555_p7 = scmp.ne.s32.totalorder %s210_s26, %s3554_s25  ;;  %p3559_p8 = scmp.lt.s32.totalorder %s210_s26, %s210_s26 }
  0x63   :  { %p3560_p9 = scmp.lt.s32.totalorder %s3558_s11, %s3554_s25 }
  0x65   :  { %p3561_p10 = por %p3560_p9, %p3559_p8 }
  0x67   :  { %p3562_p11 = pnand %p3561_p10, %p3555_p7 }
  0x69   :  { %3565 = shalt.err (!%p3562_p11)
}
  0x6a   :  { %212 = dma.hbm_to_vmem [thread:$0]  %s4310_s15, 16, %s210_s26, [#allocation27]  }
  0x6b   :  { %s3574_s29 = scalar_lea.vmem %s43_s28, 256  ;;  %p3579_p13 = scmp.lt.s32.totalorder %s43_s28, %s43_s28 }
  0x6c   :  { %p3575_p12 = scmp.ne.s32.totalorder %s43_s28, %s3574_s29  ;;  %p3580_p0 = scmp.lt.s32.totalorder %s3574_s29, %s3574_s29 }
  0x6e   :  { %p3581_p1 = por %p3580_p0, %p3579_p13 }
  0x70   :  { %p3582_p2 = pnand %p3581_p1, %p3575_p12 }
  0x72   :  { %3585 = shalt.err (!%p3582_p2)
}
  0x73   :  { %s3819_s13 = smov 128   ;;  %s3820_s0 = smov 8  }
  0x74   :  { %s4326_s4 = sld [smem:[#allocation43_spill]]  ;;  %s3821_s1 = smov [#allocation7]  }
  0x75   :  { %s66_s30 = sshll.u32 %s3821_s1, 4  ;;  %s3822_s15 = smov [#allocation10]   ;;  %s67_s30 = int_to_ptr.vmem [resolvable:$true] %s66_s30 }
  0x76   :  { %s88_s9 = sshll.u32 %s3822_s15, 4  ;;  %s3594_s23 = scalar_lea.vmem %s67_s30, 512  ;;  %s89_s9 = int_to_ptr.vmem [resolvable:$true] %s88_s9 }
  0x77   :  { %p3595_p3 = scmp.ne.s32.totalorder %s67_s30, %s3594_s23  ;;  %p3599_p4 = scmp.lt.s32.totalorder %s67_s30, %s67_s30 }
  0x78   :  { %p3600_p5 = scmp.lt.s32.totalorder %s3594_s23, %s3594_s23 }
  0x7a   :  { %48 = dma.hbm_to_vmem [thread:$0]  %s4326_s4, 256, %s43_s28, [#allocation3], %s3819_s13, %s3819_s13, %s3820_s0  }
  0x7b   :  { %p3601_p6 = por %p3600_p5, %p3599_p4 }
  0x7d   :  { %p3602_p7 = pnand %p3601_p6, %p3595_p3 }
  0x7f   :  { %3605 = shalt.err (!%p3602_p7)
}
  0x80   :  { %s4327_s26 = sld [smem:[#allocation45_spill]]  ;;  %s3614_s22 = scalar_lea.vmem %s89_s9, 512 }
  0x81   :  { %p3615_p8 = scmp.ne.s32.totalorder %s89_s9, %s3614_s22  ;;  %p3619_p9 = scmp.lt.s32.totalorder %s89_s9, %s89_s9 }
  0x82   :  { %p3620_p10 = scmp.lt.s32.totalorder %s3614_s22, %s3614_s22 }
  0x84   :  { %p3621_p11 = por %p3620_p10, %p3619_p9 }
  0x86   :  { %72 = dma.hbm_to_vmem [thread:$0]  %s4327_s26, 512, %s67_s30, [#allocation6], %s3819_s13, %s3819_s13, %s3820_s0  }
  0x87   :  { %p3622_p12 = pnand %p3621_p11, %p3615_p8 }
  0x89   :  { %3625 = shalt.err (!%p3622_p12)
}
  0x8a   :  { %s4328_s11 = sld [smem:[#allocation47_spill]]  ;;  %s3823_s27 = smov [#allocation13]  }
  0x8b   :  { %s110_s3 = sshll.u32 %s3823_s27, 4  ;;  %s3824_s29 = smov [#allocation16]   ;;  %s111_s3 = int_to_ptr.vmem [resolvable:$true] %s110_s3 }
  0x8c   :  { %s132_s5 = sshll.u32 %s3824_s29, 4  ;;  %s3634_s7 = scalar_lea.vmem %s111_s3, 512  ;;  %s133_s5 = int_to_ptr.vmem [resolvable:$true] %s132_s5 }
  0x8d   :  { %p3635_p13 = scmp.ne.s32.totalorder %s111_s3, %s3634_s7  ;;  %p3639_p0 = scmp.lt.s32.totalorder %s111_s3, %s111_s3 }
  0x8e   :  { %p3640_p1 = scmp.lt.s32.totalorder %s3634_s7, %s3634_s7 }
  0x90   :  { %94 = dma.hbm_to_vmem [thread:$0]  %s4328_s11, 512, %s89_s9, [#allocation9], %s3819_s13, %s3819_s13, %s3820_s0  }
  0x91   :  { %p3641_p2 = por %p3640_p1, %p3639_p0 }
  0x93   :  { %p3642_p3 = pnand %p3641_p2, %p3635_p13 }
  0x95   :  { %3645 = shalt.err (!%p3642_p3)
}
  0x96   :  { %116 = dma.hbm_to_vmem [thread:$0]  %s4301_s6, 512, %s111_s3, [#allocation12], %s3819_s13, %s3819_s13, %s3820_s0  }
  0x97   :  { %s3654_s30 = scalar_lea.vmem %s133_s5, 512  ;;  %p3659_p5 = scmp.lt.s32.totalorder %s133_s5, %s133_s5 }
  0x98   :  { %p3655_p4 = scmp.ne.s32.totalorder %s133_s5, %s3654_s30  ;;  %p3660_p6 = scmp.lt.s32.totalorder %s3654_s30, %s3654_s30 }
  0x9a   :  { %p3661_p7 = por %p3660_p6, %p3659_p5 }
  0x9c   :  { %p3662_p8 = pnand %p3661_p7, %p3655_p4 }
  0x9e   :  { %3665 = shalt.err (!%p3662_p8)
}
  0x9f   :  { %138 = dma.hbm_to_vmem [thread:$0]  %s4303_s8, 512, %s133_s5, [#allocation15], %s3819_s13, %s3819_s13, %s3820_s0  }
  0xa0   :  { %s3825_s23 = smov [#allocation19]   ;;  %s3826_s2 = smov [#allocation22]  }
  0xa1   :  { %s155_s24 = sshll.u32 %s3825_s23, 4  ;;  %s174_s6 = sshll.u32 %s3826_s2, 4  ;;  %s156_s24 = int_to_ptr.vmem [resolvable:$true] %s155_s24  ;;  %s175_s6 = int_to_ptr.vmem [resolvable:$true] %s174_s6 }
  0xa2   :  { %s3674_s26 = scalar_lea.vmem %s156_s24, 16  ;;  %s3678_s22 = scalar_lea.vmem %s156_s24, 32 }
  0xa3   :  { %p3675_p9 = scmp.ne.s32.totalorder %s156_s24, %s3674_s26  ;;  %p3679_p10 = scmp.lt.s32.totalorder %s156_s24, %s156_s24 }
  0xa4   :  { %p3680_p11 = scmp.lt.s32.totalorder %s3678_s22, %s3674_s26 }
  0xa6   :  { %p3681_p12 = por %p3680_p11, %p3679_p10 }
  0xa8   :  { %p3682_p13 = pnand %p3681_p12, %p3675_p9 }
  0xaa   :  { %3685 = shalt.err (!%p3682_p13)
}
  0xab   :  { %158 = dma.hbm_to_vmem [thread:$0]  %s4305_s10, 16, %s156_s24, [#allocation18]  }
  0xac   :  { %s3694_s11 = scalar_lea.vmem %s175_s6, 512  ;;  %p3699_p1 = scmp.lt.s32.totalorder %s175_s6, %s175_s6 }
  0xad   :  { %p3695_p0 = scmp.ne.s32.totalorder %s175_s6, %s3694_s11  ;;  %p3700_p2 = scmp.lt.s32.totalorder %s3694_s11, %s3694_s11 }
  0xaf   :  { %p3701_p3 = por %p3700_p2, %p3699_p1 }
  0xb1   :  { %p3702_p4 = pnand %p3701_p3, %p3695_p0 }
  0xb3   :  { %3705 = shalt.err (!%p3702_p4)
}
  0xb4   :  { %180 = dma.hbm_to_vmem [thread:$0]  %s4307_s12, 512, %s175_s6, [#allocation21], %s3819_s13, %s3819_s13, %s3820_s0  }
  0xb5   :  { %s3827_s3 = smov [#allocation25]   ;;  %s3828_s5 = smov [#allocation28]  }
  0xb6   :  { %s196_s29 = sshll.u32 %s3827_s3, 4  ;;  %s219_s10 = sshll.u32 %s3828_s5, 4  ;;  %s197_s29 = int_to_ptr.vmem [resolvable:$true] %s196_s29  ;;  %s220_s10 = int_to_ptr.vmem [resolvable:$true] %s219_s10 }
  0xb7   :  { %s3714_s7 = scalar_lea.vmem %s197_s29, 512  ;;  %p3719_p6 = scmp.lt.s32.totalorder %s197_s29, %s197_s29 }
  0xb8   :  { %p3715_p5 = scmp.ne.s32.totalorder %s197_s29, %s3714_s7  ;;  %p3720_p7 = scmp.lt.s32.totalorder %s3714_s7, %s3714_s7 }
  0xba   :  { %p3721_p8 = por %p3720_p7, %p3719_p6 }
  0xbc   :  { %p3722_p9 = pnand %p3721_p8, %p3715_p5 }
  0xbe   :  { %3725 = shalt.err (!%p3722_p9)
}
  0xbf   :  { %202 = dma.hbm_to_vmem [thread:$0]  %s4309_s14, 512, %s197_s29, [#allocation24], %s3819_s13, %s3819_s13, %s3820_s0  }
  0xc0   :  { %s3734_s12 = scalar_lea.vmem %s220_s10, 16  ;;  %s3738_s30 = scalar_lea.vmem %s220_s10, 32 }
  0xc1   :  { %p3735_p10 = scmp.ne.s32.totalorder %s220_s10, %s3734_s12  ;;  %p3739_p11 = scmp.lt.s32.totalorder %s220_s10, %s220_s10 }
  0xc2   :  { %p3740_p12 = scmp.lt.s32.totalorder %s3738_s30, %s3734_s12 }
  0xc4   :  { %p3741_p13 = por %p3740_p12, %p3739_p11 }
  0xc6   :  { %p3742_p0 = pnand %p3741_p13, %p3735_p10 }
  0xc8   :  { %3745 = shalt.err (!%p3742_p0)
}
  0xc9   :  { %222 = dma.hbm_to_vmem [thread:$0]  %s4311_s16, 16, %s220_s10, [#allocation27]  }
  0xca   :  { %s3829_s23 = smov [#allocation29]  }
  0xcb   :  { %s229_s24 = sshll.u32 %s3829_s23, 4  ;;  %s230_s24 = int_to_ptr.vmem [resolvable:$true] %s229_s24 }
  0xcc   :  { %s3754_s2 = scalar_lea.vmem %s230_s24, 16  ;;  %s3758_s6 = scalar_lea.vmem %s230_s24, 32 }
  0xcd   :  { %p3755_p1 = scmp.ne.s32.totalorder %s230_s24, %s3754_s2  ;;  %p3759_p2 = scmp.lt.s32.totalorder %s230_s24, %s230_s24 }
  0xce   :  { %p3760_p3 = scmp.lt.s32.totalorder %s3758_s6, %s3754_s2 }
  0xd0   :  { %p3761_p4 = por %p3760_p3, %p3759_p2 }
  0xd2   :  { %p3762_p5 = pnand %p3761_p4, %p3755_p1 }
  0xd4   :  { %3765 = shalt.err (!%p3762_p5)
}
  0xd5   :  { %232 = dma.hbm_to_vmem [thread:$0]  %s4312_s17, 16, %s230_s24, [#allocation30]  }
  0xd6   :  { %3786 = dma.done.wait [#allocation3], 256  }
  0xd7   :  { %3787 = vsyncadd [#allocation3], 4294967040 }
  0xd8   :  { %3788 = dma.done.wait [#allocation6], 544  }
  0xd9   :  { %3789 = vsyncadd [#allocation6], 4294966752 }
  0xda   :  { %3790 = dma.done.wait [#allocation9], 528  }
  0xdb   :  { %3791 = vsyncadd [#allocation9], 4294966768 }
  0xdc   :  { %3792 = dma.done.wait [#allocation12], 528  }
  0xdd   :  { %3793 = vsyncadd [#allocation12], 4294966768 }
  0xde   :  { %3794 = dma.done.wait [#allocation15], 528  }
  0xdf   :  { %3795 = vsyncadd [#allocation15], 4294966768 }
  0xe0   :  { %3796 = dma.done.wait [#allocation18], 32  }
  0xe1   :  { %3797 = vsyncadd [#allocation18], 4294967264 }
  0xe2   :  { %3798 = dma.done.wait [#allocation21], 528  }
  0xe3   :  { %3799 = vsyncadd [#allocation21], 4294966768 }
  0xe4   :  { %3800 = dma.done.wait [#allocation24], 528  }
  0xe5   :  { %3801 = vsyncadd [#allocation24], 4294966768 }
  0xe6   :  { %3802 = dma.done.wait [#allocation27], 32  }
  0xe7   :  { %3803 = vsyncadd [#allocation27], 4294967264 }
  0xe8   :  { %3804 = dma.done.wait [#allocation30], 16  }
  0xe9   :  { %3805 = vsyncadd [#allocation30], 4294967280  ;;  %v395_v0 = vld [vmem:[#allocation10 + $0x18] sm:$0xff]  ;;  %v394_v2 = vld [vmem:[#allocation10 + $0x10] sm:$0xff]  ;;  %vm301_vm0 = vcmask 261120   ;;  %v3830_v10 = vmov 0.0   ;;  %v727_v25 = vlaneseq }
  0xea   :  { %v300_v1 = vld [vmem:[#allocation7 + $0x18] sm:$0xff]  ;;  %3150 = vmatprep.subr.mxu1 %v395_v0  ;;  %v299_v3 = vld [vmem:[#allocation7 + $0x10] sm:$0xff]  ;;  %v298_v5 = vld [vmem:[#allocation7 + $0x8] sm:$0xff]  ;;  %vm3831_vm1 = vmmov 0   ;;  %vm568_vm2 = vcmask 64512   ;;  %v3832_v30 = vmov 0  }
  0xeb   :  { %3139 = vmatprep.subr.mxu0 %v300_v1  ;;  %3151 = vmatpush3.msra.mxu1 %v395_v0  ;;  %v393_v4 = vld [vmem:[#allocation10 + $0x8] sm:$0xff]  ;;  %v392_v6 = vld [vmem:[#allocation10] sm:$0xff]  ;;  %v4024_v9 = vld [vmem:[#allocation2 + $0x8] sm:$0xff]  ;;  %v728_v27 = vshrl.u32 %v727_v25, 7  ;;  %s3833_s16 = smov 120   ;;  %s3834_s17 = smov 112  }
  0xec   :  { %3140 = vmatpush3.msra.mxu0 %v300_v1  ;;  %3152 = vmatprep.subr.mxu1 %v394_v2  ;;  %v297_v7 = vld [vmem:[#allocation7] sm:$0xff]  ;;  %v4022_v8 = vld [vmem:[#allocation2] sm:$0xff]  ;;  %v4066_v26 = vld [vmem:[#allocation5] sm:$0x1]  ;;  %s3835_s0 = smov 104   ;;  %vm2789_vm7 = vcmask 57344  }
  0xed   :  { %3141 = vmatprep.subr.mxu0 %v299_v3  ;;  %3153 = vmatpush3.msra.mxu1 %v394_v2  ;;  %v2995_v13 = vld [vmem:[#allocation11] ss:$0 sm:$0xff]  ;;  %v2992_v15 = vld [vmem:[#allocation8] ss:$0 sm:$0xff]  ;;  %v482_v22 = vld [vmem:[#allocation13 + $0x10] sm:$0xff]  ;;  %vm723_vm3 = vcmp.gt.f32.partialorder %v4066_v26, 0.5 }
  0xee   :  { %3142 = vmatpush3.msra.mxu0 %v299_v3  ;;  %3154 = vmatprep.subr.mxu1 %v393_v4  ;;  %v483_v21 = vld [vmem:[#allocation13 + $0x18] sm:$0xff]  ;;  %v481_v23 = vld [vmem:[#allocation13 + $0x8] sm:$0xff]  ;;  %v480_v24 = vld [vmem:[#allocation13] sm:$0xff]  ;;  %v729_v29 = vsub.s32 0, %v728_v27  ;;  %v725_v31 = vsel %vm723_vm3, 1, %v3832_v30  ;;  %vm2961_vm8 = vcmask 1041409  }
  0xef   :  { %3143 = vmatprep.subr.mxu0 %v298_v5  ;;  %3155 = vmatpush3.msra.mxu1 %v393_v4  ;;  %v4069_v28 = vld [vmem:[#allocation5 + $0x1] sm:$0x1]  ;;  %v2998_v56 = vld [vmem:[#allocation14] ss:$0 sm:$0xff]  ;;  %vm2964_vm9 = vcmask 254976  }
  0xf0   :  { %3144 = vmatpush3.msra.mxu0 %v298_v5  ;;  %3156 = vmatprep.subr.mxu1 %v392_v6  ;;  %vm724_vm4 = vcmp.gt.f32.partialorder %v4069_v28, 0.5  ;;  %v4074_v32 = vrot.slane %v725_v31, %v729_v29  ;;  %v907_v5 = vld [vmem:[#allocation16] sm:$0xff] }
  0xf1   :  { %3145 = vmatprep.subr.mxu0 %v297_v7  ;;  %3157 = vmatpush3.msra.mxu1 %v392_v6  ;;  %v726_v33 = vsel %vm724_vm4, 1, %v3832_v30 }
  0xf2   :  { %3158 = vmatprep.mubr.msk.f32.mxu1 %vm301_vm0, %v4022_v8  ;;  %3146 = vmatpush3.msra.mxu0 %v297_v7  ;;  %vm735_vm5 = vcmp.eq.s32.totalorder %v4074_v32, 1  ;;  %v4079_v35 = vrot.slane %v726_v33, %v729_v29 }
  0xf3   :  { %3147 = vmatprep.mubr.msk.f32.mxu0 %vm301_vm0, %v4022_v8  ;;  %3159 = vmatmul.mubr.msk.f32.vlgmr.msra.gmra.mxu1 %vm301_vm0, %v4024_v9 }
  0xf4   :  { %3148 = vmatmul.mubr.msk.f32.vlgmr.msra.gmra.mxu0 %vm301_vm0, %v4024_v9  ;;  %3172 = vmatprep.subr.mxu1 %v3830_v10  ;;  %vm736_vm6 = vcmp.eq.s32.totalorder %v4079_v35, 1 }
  0xf5   :  { %3169 = vmatprep.mubr.msk.f32.mxu0 %vm301_vm0, %v4022_v8  ;;  %3174 = vmatprep.mubr.msk.f32.mxu1 %vm3831_vm1, %v3830_v10 }
  0xf6   :  { %3161 = vmatprep.subr.mxu0 %v483_v21 }
  0xf7   :  { %3162 = vmatpush3.msra.mxu0 %v483_v21 }
  0xf8   :  { %3163 = vmatprep.subr.mxu0 %v482_v22 }
  0xf9   :  { %3164 = vmatpush3.msra.mxu0 %v482_v22 }
  0xfa   :  { %3165 = vmatprep.subr.mxu0 %v481_v23 }
  0xfb   :  { %3166 = vmatpush3.msra.mxu0 %v481_v23 }
  0xfc   :  { %3167 = vmatprep.subr.mxu0 %v480_v24 }
  0xfd   :  { %3168 = vmatpush3.msra.mxu0 %v480_v24 }
  0xfe   :  { %3170 = vmatmul.mubr.msk.f32.vlgmr.msra.gmra.mxu0 %vm301_vm0, %v4024_v9  ;;  %3182 = vmatprep.subr.mxu0 %v3830_v10 }
  0xff   :  { %3184 = vmatprep.mubr.msk.f32.mxu0 %vm3831_vm1, %v3830_v10 }
 0x1b3   :  { %v3160_v11 = vpop.f32.mrf.mxu1 }
 0x1b4   :  { %v3149_v12 = vpop.f32.mrf.mxu0  ;;  %v4046_v19 = vadd.f32 %v3160_v11, %v2995_v13 }
 0x1b5   :  { %v462_v14 = vpop.f32.mrf.mxu1  ;;  %v4054_v20 = vadd.f32 %v3149_v12, %v2992_v15 }
 0x1b6   :  { %v4039_v16 = vadd.f32 %v2995_v13, %v462_v14  ;;  %v374_v17 = vpop.f32.mrf.mxu0 }
 0x1b7   :  { %v4043_v18 = vadd.f32 %v2992_v15, %v374_v17 }
 0x1b8   :  { %3173 = vmatpush3.xpose.msk.msra.mxu1 %vm568_vm2, %v4039_v16 }
 0x1b9   :  { %3177 = vmatprep.subr.mxu1 %v3830_v10 }
 0x1bb   :  { %3175 = vmatmul.mubr.msk.f32.vlgmr.msra.gmra.mxu1 %vm568_vm2, %v4043_v18 }
 0x1bc   :  { %3178 = vmatpush3.xpose.msk.msra.mxu1 %vm568_vm2, %v4046_v19  ;;  %3179 = vmatprep.mubr.msk.f32.mxu1 %vm3831_vm1, %v3830_v10 }
 0x1bd   :  { %3187 = vmatprep.subr.mxu1 %v3830_v10 }
 0x1be   :  { %v3171_v55 = vpop.f32.mrf.mxu0 }
 0x1bf   :  { %3180 = vmatmul.mubr.msk.f32.vlgmr.msra.gmra.mxu1 %vm568_vm2, %v4054_v20  ;;  %v4092_v57 = vadd.f32 %v3171_v55, %v2998_v56 }
 0x1c0   :  { %3189 = vmatprep.mubr.msk.f32.mxu1 %vm3831_vm1, %v3830_v10  ;;  %v550_v58 = vpop.f32.mrf.mxu0 }
 0x1c1   :  { %v4094_v59 = vadd.f32 %v2998_v56, %v550_v58  ;;  %3188 = vmatpush3.msra.mxu1 %v4092_v57 }
 0x1c2   :  { %3197 = vmatprep.subr.mxu1 %v3830_v10 }
 0x1c3   :  { %3183 = vmatpush3.msra.mxu0 %v4094_v59 }
 0x1c4   :  { %3192 = vmatprep.subr.mxu0 %v907_v5 }
 0x27b   :  { %v641_v34 = vpop.f32.mrf.mxu1 }
 0x27c   :  { %v721_v36 = vmul.f32 0.35355338, %v641_v34 }
 0x27d   :  { %v3176_v37 = vpop.f32.mrf.mxu1 }
 0x27e   :  { %v737_v38 = vsel %vm735_vm5, %v721_v36, -1e+09 }
 0x27f   :  { %v717_v39 = vpop.f32.mrf.mxu1  ;;  %v739_v40 = vsel %vm568_vm2, %v737_v38, -inf }
 0x280   :  { %v722_v41 = vmul.f32 0.35355338, %v717_v39  ;;  %740 = vmax.xlane.f32.xlu0 %v739_v40 }
 0x281   :  { %v3181_v42 = vpop.f32.mrf.mxu1 }
 0x282   :  { %v738_v43 = vsel %vm736_vm6, %v722_v41, -1e+09 }
 0x283   :  { %v742_v44 = vsel %vm568_vm2, %v738_v43, -inf }
 0x284   :  { %743 = vmax.xlane.f32.xlu0 %v742_v44 }
 0x29a   :  { %993 = vrot.lane.b32.xlu0 %v4039_v16, %s3833_s16 }
 0x309   :  { %v741_v45 = vpop.xlane.xlu0 %740 }
 0x30a   :  { %v745_v46 = vsub.f32 %v737_v38, %v741_v45 }
 0x30c   :  { %v747_v47 = vmul.f32 1.442695, %v745_v46 }
 0x30d   :  { %v744_v48 = vpop.xlane.xlu0 %743 }
 0x30e   :  { %3354 = vpow2.f32 %v747_v47  ;;  %v746_v49 = vsub.f32 %v738_v43, %v744_v48 }
 0x310   :  { %v749_v50 = vmul.f32 1.442695, %v746_v49 }
 0x311   :  { %v994_v3 = vpop.permute.xlu0 %993 }
 0x312   :  { %3356 = vpow2.f32 %v749_v50 }
 0x31b   :  { %v3355_v51 = vpop.eup %3354 }
 0x31c   :  { %v751_v52 = vsel %vm568_vm2, %v3355_v51, 0.0 }
 0x31d   :  { %752 = vadd.xlane.f32.xlu1 %v751_v52 }
 0x31f   :  { %v3357_v53 = vpop.eup %3356 }
 0x320   :  { %v754_v54 = vsel %vm568_vm2, %v3357_v53, 0.0 }
 0x321   :  { %755 = vadd.xlane.f32.xlu1 %v754_v54  ;;  %v1327_v54 = vld [vmem:[#allocation16 + $0x8] sm:$0xff] }
 0x332   :  { %1071 = vrot.lane.b32.xlu1 %v4046_v19, %s3833_s16 }
 0x336   :  { %991 = vrot.lane.b32.xlu1 %v4043_v18, %s3833_s16 }
 0x33a   :  { %1069 = vrot.lane.b32.xlu1 %v4054_v20, %s3833_s16 }
 0x3a6   :  { %v753_v60 = vpop.xlane.xlu1 %752 }
 0x3a7   :  { %3358 = vrcp.f32 %v753_v60 }
 0x3aa   :  { %v756_v61 = vpop.xlane.xlu1 %755 }
 0x3ab   :  { %3360 = vrcp.f32 %v756_v61 }
 0x3ae   :  { %v1072_v1 = vpop.permute.xlu1 %1071 }
 0x3b2   :  { %v992_v4 = vpop.permute.xlu1 %991 }
 0x3b4   :  { %v3359_v62 = vpop.eup %3358 }
 0x3b5   :  { %v758_v63 = vmul.f32 %v3359_v62, %v3355_v51 }
 0x3b6   :  { %v1070_v13 = vpop.permute.xlu1 %1069 }
 0x3b7   :  { %3185 = vmatmul.mubr.msk.f32.vlgmr.msra.gmra.mxu0 %vm568_vm2, %v758_v63 }
 0x3b8   :  { %v3361_v0 = vpop.eup %3360  ;;  %3193 = vmatpush3.msra.mxu0 %v907_v5 }
 0x3b9   :  { %v760_v2 = vmul.f32 %v3361_v0, %v3357_v53  ;;  %3202 = vmatprep.subr.mxu0 %v3830_v10 }
 0x3bb   :  { %3190 = vmatmul.mubr.msk.f32.vlgmr.msra.gmra.mxu1 %vm568_vm2, %v760_v2 }
 0x3bc   :  { %3198 = vmatpush3.xpose.msk.msra.mxu1 %vm568_vm2, %v994_v3  ;;  %3199 = vmatprep.mubr.msk.f32.mxu1 %vm3831_vm1, %v3830_v10 }
 0x3bd   :  { %3207 = vmatprep.subr.mxu1 %v3830_v10 }
 0x3bf   :  { %3200 = vmatmul.mubr.msk.f32.vlgmr.msra.gmra.mxu1 %vm568_vm2, %v992_v4 }
 0x3c0   :  { %3209 = vmatprep.mubr.msk.f32.mxu1 %vm3831_vm1, %v3830_v10 }
 0x477   :  { %v830_v6 = vpop.f32.mrf.mxu0 }
 0x478   :  { %3194 = vmatprep.mubr.msk.f32.mxu0 %vm568_vm2, %v830_v6 }
 0x479   :  { %v3186_v7 = vpop.f32.mrf.mxu0 }
 0x47b   :  { %v903_v11 = vpop.f32.mrf.mxu1 }
 0x47c   :  { %3195 = vmatmul.mubr.msk.f32.vlgmr.msra.gmra.mxu0 %vm568_vm2, %v903_v11 }
 0x47d   :  { %3203 = vmatpush3.xpose.msk.msra.mxu0 %vm568_vm2, %v1072_v1  ;;  %v3191_v12 = vpop.f32.mrf.mxu1  ;;  %3204 = vmatprep.mubr.msk.f32.mxu0 %vm3831_vm1, %v3830_v10 }
 0x47e   :  { %3212 = vmatprep.subr.mxu0 %v3830_v10 }
 0x47f   :  { %v1065_v14 = vpop.f32.mrf.mxu1 }
 0x480   :  { %v1147_v15 = vmul.f32 0.35355338, %v1065_v14  ;;  %3205 = vmatmul.mubr.msk.f32.vlgmr.msra.gmra.mxu0 %vm568_vm2, %v1070_v13 }
 0x481   :  { %v3201_v17 = vpop.f32.mrf.mxu1  ;;  %3214 = vmatprep.mubr.msk.f32.mxu0 %vm3831_vm1, %v3830_v10 }
 0x482   :  { %v1149_v21 = vsel %vm735_vm5, %v1147_v15, -1e+09 }
 0x483   :  { %v1151_v22 = vsel %vm568_vm2, %v1149_v21, -inf }
 0x484   :  { %1152 = vmax.xlane.f32.xlu0 %v1151_v22 }
 0x50d   :  { %v1153_v23 = vpop.xlane.xlu0 %1152 }
 0x50e   :  { %v1157_v24 = vsub.f32 %v1149_v21, %v1153_v23 }
 0x510   :  { %v1159_v25 = vmul.f32 1.442695, %v1157_v24 }
 0x512   :  { %3362 = vpow2.f32 %v1159_v25 }
 0x51f   :  { %v3363_v27 = vpop.eup %3362 }
 0x520   :  { %v1163_v29 = vsel %vm568_vm2, %v3363_v27, 0.0 }
 0x521   :  { %1164 = vadd.xlane.f32.xlu0 %v1163_v29 }
 0x53c   :  { %v4128_v30 = vpop.f32.mrf.mxu0 }
 0x53e   :  { %v4130_v31 = vpop.f32.mrf.mxu0 }
 0x540   :  { %v1143_v33 = vpop.f32.mrf.mxu0 }
 0x541   :  { %v1148_v34 = vmul.f32 0.35355338, %v1143_v33 }
 0x542   :  { %v3206_v36 = vpop.f32.mrf.mxu0 }
 0x543   :  { %v1150_v37 = vsel %vm736_vm6, %v1148_v34, -1e+09 }
 0x544   :  { %v1154_v38 = vsel %vm568_vm2, %v1150_v37, -inf }
 0x545   :  { %1155 = vmax.xlane.f32.xlu1 %v1154_v38 }
 0x556   :  { %1251 = vrot.lane.b32.xlu1 %v4092_v57, %s3833_s16 }
 0x55a   :  { %1413 = vrot.lane.b32.xlu1 %v4039_v16, %s3834_s17 }
 0x55e   :  { %1491 = vrot.lane.b32.xlu1 %v4046_v19, %s3834_s17 }
 0x562   :  { %1489 = vrot.lane.b32.xlu1 %v4054_v20, %s3834_s17 }
 0x5aa   :  { %v1165_v45 = vpop.xlane.xlu0 %1164 }
 0x5ce   :  { %v1156_v39 = vpop.xlane.xlu1 %1155 }
 0x5cf   :  { %v1158_v40 = vsub.f32 %v1150_v37, %v1156_v39 }
 0x5d1   :  { %v1161_v41 = vmul.f32 1.442695, %v1158_v40  ;;  %v1745_v40 = vld [vmem:[#allocation16 + $0x10] sm:$0xff] }
 0x5d2   :  { %v1252_v42 = vpop.permute.xlu1 %1251 }
 0x5d3   :  { %3364 = vpow2.f32 %v1161_v41  ;;  %3213 = vmatpush3.msra.mxu0 %v1252_v42 }
 0x5d4   :  { %3222 = vmatprep.subr.mxu0 %v3830_v10  ;;  %3366 = vrcp.f32 %v1165_v45 }
 0x5d6   :  { %v1414_v52 = vpop.permute.xlu1 %1413 }
 0x5da   :  { %v1492_v58 = vpop.permute.xlu1 %1491 }
 0x5de   :  { %v1490_v62 = vpop.permute.xlu1 %1489 }
 0x5e0   :  { %v3365_v43 = vpop.eup %3364 }
 0x5e1   :  { %v1166_v44 = vsel %vm568_vm2, %v3365_v43, 0.0  ;;  %v3367_v47 = vpop.eup %3366 }
 0x5e2   :  { %1167 = vadd.xlane.f32.xlu0 %v1166_v44  ;;  %v1170_v49 = vmul.f32 %v3367_v47, %v3363_v27 }
 0x5f8   :  { %1174 = vrot.lane.b32.xlu0 %v4094_v59, %s3833_s16 }
 0x5fc   :  { %1411 = vrot.lane.b32.xlu0 %v4043_v18, %s3834_s17 }
 0x66b   :  { %v1168_v46 = vpop.xlane.xlu0 %1167 }
 0x66c   :  { %3368 = vrcp.f32 %v1168_v46 }
 0x66f   :  { %v1175_v48 = vpop.permute.xlu0 %1174 }
 0x670   :  { %3208 = vmatpush3.msra.mxu1 %v1175_v48 }
 0x671   :  { %3210 = vmatmul.mubr.msk.f32.vlgmr.msra.gmra.mxu1 %vm568_vm2, %v1170_v49  ;;  %3217 = vmatprep.subr.mxu1 %v1327_v54 }
 0x672   :  { %3218 = vmatpush3.msra.mxu1 %v1327_v54 }
 0x673   :  { %v1412_v53 = vpop.permute.xlu0 %1411  ;;  %3227 = vmatprep.subr.mxu1 %v3830_v10 }
 0x679   :  { %v3369_v50 = vpop.eup %3368 }
 0x67a   :  { %v1172_v51 = vmul.f32 %v3369_v50, %v3365_v43 }
 0x67c   :  { %3215 = vmatmul.mubr.msk.f32.vlgmr.msra.gmra.mxu0 %vm568_vm2, %v1172_v51 }
 0x67d   :  { %3223 = vmatpush3.xpose.msk.msra.mxu0 %vm568_vm2, %v1414_v52  ;;  %3224 = vmatprep.mubr.msk.f32.mxu0 %vm3831_vm1, %v3830_v10 }
 0x67e   :  { %3232 = vmatprep.subr.mxu0 %v3830_v10 }
 0x680   :  { %3225 = vmatmul.mubr.msk.f32.vlgmr.msra.gmra.mxu0 %vm568_vm2, %v1412_v53 }
 0x681   :  { %3234 = vmatprep.mubr.msk.f32.mxu0 %vm3831_vm1, %v3830_v10 }
 0x731   :  { %v1246_v55 = vpop.f32.mrf.mxu1 }
 0x732   :  { %3219 = vmatprep.mubr.msk.f32.mxu1 %vm568_vm2, %v1246_v55 }
 0x733   :  { %v3211_v56 = vpop.f32.mrf.mxu1 }
 0x73c   :  { %v1323_v60 = vpop.f32.mrf.mxu0 }
 0x73d   :  { %3220 = vmatmul.mubr.msk.f32.vlgmr.msra.gmra.mxu1 %vm568_vm2, %v1323_v60 }
 0x73e   :  { %3228 = vmatpush3.xpose.msk.msra.mxu1 %vm568_vm2, %v1492_v58  ;;  %v3216_v61 = vpop.f32.mrf.mxu0  ;;  %3229 = vmatprep.mubr.msk.f32.mxu1 %vm3831_vm1, %v3830_v10 }
 0x73f   :  { %3237 = vmatprep.subr.mxu1 %v3830_v10 }
 0x740   :  { %v1485_v63 = vpop.f32.mrf.mxu0 }
 0x741   :  { %v1567_v0 = vmul.f32 0.35355338, %v1485_v63  ;;  %3230 = vmatmul.mubr.msk.f32.vlgmr.msra.gmra.mxu1 %vm568_vm2, %v1490_v62 }
 0x742   :  { %v3226_v1 = vpop.f32.mrf.mxu0  ;;  %3239 = vmatprep.mubr.msk.f32.mxu1 %vm3831_vm1, %v3830_v10 }
 0x743   :  { %v1569_v2 = vsel %vm735_vm5, %v1567_v0, -1e+09 }
 0x744   :  { %v1571_v3 = vsel %vm568_vm2, %v1569_v2, -inf }
 0x745   :  { %1572 = vmax.xlane.f32.xlu0 %v1571_v3 }
 0x7ce   :  { %v1573_v4 = vpop.xlane.xlu0 %1572 }
 0x7cf   :  { %v1577_v5 = vsub.f32 %v1569_v2, %v1573_v4 }
 0x7d1   :  { %v1579_v6 = vmul.f32 1.442695, %v1577_v5 }
 0x7d3   :  { %3370 = vpow2.f32 %v1579_v6 }
 0x7e0   :  { %v3371_v7 = vpop.eup %3370 }
 0x7e1   :  { %v1583_v11 = vsel %vm568_vm2, %v3371_v7, 0.0 }
 0x7e2   :  { %1584 = vadd.xlane.f32.xlu0 %v1583_v11 }
 0x7fd   :  { %v4172_v12 = vpop.f32.mrf.mxu1 }
 0x7fe   :  { %v1410_v58 = vadd.f32 %v4172_v12, %v4128_v30 }
 0x7ff   :  { %v4174_v13 = vpop.f32.mrf.mxu1 }
 0x800   :  { %v1409_v61 = vadd.f32 %v4174_v13, %v4130_v31 }
 0x801   :  { %v1563_v14 = vpop.f32.mrf.mxu1 }
 0x802   :  { %v1568_v15 = vmul.f32 0.35355338, %v1563_v14 }
 0x803   :  { %v3231_v17 = vpop.f32.mrf.mxu1 }
 0x804   :  { %v1570_v21 = vsel %vm736_vm6, %v1568_v15, -1e+09 }
 0x805   :  { %v1574_v22 = vsel %vm568_vm2, %v1570_v21, -inf }
 0x806   :  { %1575 = vmax.xlane.f32.xlu1 %v1574_v22 }
 0x817   :  { %1669 = vrot.lane.b32.xlu1 %v4092_v57, %s3834_s17 }
 0x81b   :  { %1831 = vrot.lane.b32.xlu1 %v4039_v16, %s3835_s0 }
 0x81f   :  { %1909 = vrot.lane.b32.xlu1 %v4046_v19, %s3835_s0 }
 0x823   :  { %1907 = vrot.lane.b32.xlu1 %v4054_v20, %s3835_s0 }
 0x86b   :  { %v1585_v16 = vpop.xlane.xlu0 %1584 }
 0x88f   :  { %v1576_v23 = vpop.xlane.xlu1 %1575 }
 0x890   :  { %v1578_v24 = vsub.f32 %v1570_v21, %v1576_v23  ;;  %v2163_v21 = vld [vmem:[#allocation16 + $0x18] sm:$0xff] }
 0x892   :  { %v1581_v25 = vmul.f32 1.442695, %v1578_v24 }
 0x893   :  { %v1670_v27 = vpop.permute.xlu1 %1669 }
 0x894   :  { %3372 = vpow2.f32 %v1581_v25  ;;  %3238 = vmatpush3.msra.mxu1 %v1670_v27  ;;  %v3031_v27 = vld [vmem:[#allocation17] ss:$0 sm:$0xff] }
 0x895   :  { %3247 = vmatprep.subr.mxu1 %v3830_v10  ;;  %3374 = vrcp.f32 %v1585_v16 }
 0x897   :  { %v1832_v39 = vpop.permute.xlu1 %1831 }
 0x89b   :  { %v1910_v43 = vpop.permute.xlu1 %1909 }
 0x89f   :  { %v1908_v46 = vpop.permute.xlu1 %1907 }
 0x8a1   :  { %v3373_v29 = vpop.eup %3372 }
 0x8a2   :  { %v1586_v33 = vsel %vm568_vm2, %v3373_v29, 0.0  ;;  %v3375_v20 = vpop.eup %3374 }
 0x8a3   :  { %1587 = vadd.xlane.f32.xlu0 %v1586_v33  ;;  %v1590_v36 = vmul.f32 %v3375_v20, %v3371_v7 }
 0x8b9   :  { %1593 = vrot.lane.b32.xlu0 %v4094_v59, %s3834_s17 }
 0x8bd   :  { %1829 = vrot.lane.b32.xlu0 %v4043_v18, %s3835_s0 }
 0x92c   :  { %v1588_v19 = vpop.xlane.xlu0 %1587 }
 0x92d   :  { %3376 = vrcp.f32 %v1588_v19 }
 0x930   :  { %v1594_v34 = vpop.permute.xlu0 %1593 }
 0x931   :  { %3233 = vmatpush3.msra.mxu0 %v1594_v34 }
 0x932   :  { %3235 = vmatmul.mubr.msk.f32.vlgmr.msra.gmra.mxu0 %vm568_vm2, %v1590_v36  ;;  %3242 = vmatprep.subr.mxu0 %v1745_v40 }
 0x933   :  { %3243 = vmatpush3.msra.mxu0 %v1745_v40 }
 0x934   :  { %v1830_v18 = vpop.permute.xlu0 %1829  ;;  %3252 = vmatprep.subr.mxu0 %v3830_v10 }
 0x93a   :  { %v3377_v37 = vpop.eup %3376 }
 0x93b   :  { %v1592_v38 = vmul.f32 %v3377_v37, %v3373_v29 }
 0x93d   :  { %3240 = vmatmul.mubr.msk.f32.vlgmr.msra.gmra.mxu1 %vm568_vm2, %v1592_v38 }
 0x93e   :  { %3248 = vmatpush3.xpose.msk.msra.mxu1 %vm568_vm2, %v1832_v39  ;;  %3249 = vmatprep.mubr.msk.f32.mxu1 %vm3831_vm1, %v3830_v10 }
 0x93f   :  { %3257 = vmatprep.subr.mxu1 %v3830_v10 }
 0x941   :  { %3250 = vmatmul.mubr.msk.f32.vlgmr.msra.gmra.mxu1 %vm568_vm2, %v1830_v18 }
 0x942   :  { %3259 = vmatprep.mubr.msk.f32.mxu1 %vm3831_vm1, %v3830_v10 }
 0x9f2   :  { %v1665_v41 = vpop.f32.mrf.mxu0 }
 0x9f3   :  { %3244 = vmatprep.mubr.msk.f32.mxu0 %vm568_vm2, %v1665_v41 }
 0x9f4   :  { %v3236_v42 = vpop.f32.mrf.mxu0 }
 0x9fd   :  { %v1741_v44 = vpop.f32.mrf.mxu1 }
 0x9fe   :  { %3245 = vmatmul.mubr.msk.f32.vlgmr.msra.gmra.mxu0 %vm568_vm2, %v1741_v44 }
 0x9ff   :  { %3253 = vmatpush3.xpose.msk.msra.mxu0 %vm568_vm2, %v1910_v43  ;;  %v3241_v45 = vpop.f32.mrf.mxu1  ;;  %3254 = vmatprep.mubr.msk.f32.mxu0 %vm3831_vm1, %v3830_v10 }
 0xa00   :  { %3262 = vmatprep.subr.mxu0 %v3830_v10 }
 0xa01   :  { %v1903_v47 = vpop.f32.mrf.mxu1 }
 0xa02   :  { %v1985_v48 = vmul.f32 0.35355338, %v1903_v47  ;;  %3255 = vmatmul.mubr.msk.f32.vlgmr.msra.gmra.mxu0 %vm568_vm2, %v1908_v46  ;;  %v2306_v47 = vld [vmem:[#allocation22 + $0x18] sm:$0xff] }
 0xa03   :  { %v3251_v49 = vpop.f32.mrf.mxu1  ;;  %3264 = vmatprep.mubr.msk.f32.mxu0 %vm3831_vm1, %v3830_v10 }
 0xa04   :  { %v1987_v50 = vsel %vm735_vm5, %v1985_v48, -1e+09  ;;  %v2304_v48 = vld [vmem:[#allocation22 + $0x8] sm:$0xff]  ;;  %v2303_v49 = vld [vmem:[#allocation22] sm:$0xff] }
 0xa05   :  { %v1989_v51 = vsel %vm568_vm2, %v1987_v50, -inf }
 0xa06   :  { %1990 = vmax.xlane.f32.xlu0 %v1989_v51 }
 0xa8f   :  { %v1991_v52 = vpop.xlane.xlu0 %1990 }
 0xa90   :  { %v1995_v53 = vsub.f32 %v1987_v50, %v1991_v52 }
 0xa92   :  { %v1997_v54 = vmul.f32 1.442695, %v1995_v53 }
 0xa94   :  { %3378 = vpow2.f32 %v1997_v54 }
 0xaa1   :  { %v3379_v55 = vpop.eup %3378 }
 0xaa2   :  { %v2001_v56 = vsel %vm568_vm2, %v3379_v55, 0.0 }
 0xaa3   :  { %2002 = vadd.xlane.f32.xlu0 %v2001_v56 }
 0xabe   :  { %v3246_v60 = vpop.f32.mrf.mxu0 }
 0xabf   :  { %v1828_v32 = vadd.f32 %v3246_v60, %v1410_v58  ;;  %v3032_v58 = vld [vmem:[#allocation19] ss:$0 sm:$0xff] }
 0xac0   :  { %v1818_v62 = vpop.f32.mrf.mxu0 }
 0xac1   :  { %v1827_v63 = vadd.f32 %v1818_v62, %v1409_v61 }
 0xac2   :  { %v1981_v0 = vpop.f32.mrf.mxu0 }
 0xac3   :  { %v1986_v1 = vmul.f32 0.35355338, %v1981_v0 }
 0xac4   :  { %v3256_v2 = vpop.f32.mrf.mxu0 }
 0xac5   :  { %v1988_v3 = vsel %vm736_vm6, %v1986_v1, -1e+09 }
 0xac6   :  { %v1992_v4 = vsel %vm568_vm2, %v1988_v3, -inf }
 0xac7   :  { %1993 = vmax.xlane.f32.xlu1 %v1992_v4  ;;  %v2401_v4 = vld [vmem:[#allocation25 + $0x10] sm:$0xff] }
 0xad8   :  { %2087 = vrot.lane.b32.xlu1 %v4092_v57, %s3835_s0 }
 0xb2c   :  { %v2003_v35 = vpop.xlane.xlu0 %2002 }
 0xb50   :  { %v1994_v30 = vpop.xlane.xlu1 %1993 }
 0xb51   :  { %v1996_v5 = vsub.f32 %v1988_v3, %v1994_v30  ;;  %v2402_v3 = vld [vmem:[#allocation25 + $0x18] sm:$0xff]  ;;  %v2400_v30 = vld [vmem:[#allocation25 + $0x8] sm:$0xff] }
 0xb53   :  { %v1999_v6 = vmul.f32 1.442695, %v1996_v5  ;;  %v2399_v5 = vld [vmem:[#allocation25] sm:$0xff] }
 0xb54   :  { %v2088_v7 = vpop.permute.xlu1 %2087 }
 0xb55   :  { %3380 = vpow2.f32 %v1999_v6  ;;  %3263 = vmatpush3.msra.mxu0 %v2088_v7  ;;  %v3036_v6 = vld [vmem:[#allocation23] ss:$0 sm:$0xff] }
 0xb56   :  { %3382 = vrcp.f32 %v2003_v35  ;;  %3272 = vmatprep.subr.mxu0 %v2306_v47 }
 0xb62   :  { %v3381_v31 = vpop.eup %3380 }
 0xb63   :  { %v2004_v11 = vsel %vm568_vm2, %v3381_v31, 0.0  ;;  %v3383_v13 = vpop.eup %3382 }
 0xb64   :  { %2005 = vadd.xlane.f32.xlu0 %v2004_v11  ;;  %v2008_v57 = vmul.f32 %v3383_v13, %v3379_v55 }
 0xb7a   :  { %2011 = vrot.lane.b32.xlu0 %v4094_v59, %s3835_s0 }
 0xbed   :  { %v2006_v12 = vpop.xlane.xlu0 %2005 }
 0xbee   :  { %3384 = vrcp.f32 %v2006_v12 }
 0xbf1   :  { %v2012_v14 = vpop.permute.xlu0 %2011 }
 0xbf2   :  { %3258 = vmatpush3.msra.mxu1 %v2012_v14  ;;  %v3039_v14 = vld [vmem:[#allocation26] ss:$0 sm:$0xff] }
 0xbf3   :  { %3260 = vmatmul.mubr.msk.f32.vlgmr.msra.gmra.mxu1 %vm568_vm2, %v2008_v57  ;;  %3267 = vmatprep.subr.mxu1 %v2163_v21 }
 0xbf4   :  { %3268 = vmatpush3.msra.mxu1 %v2163_v21 }
 0xbf5   :  { %3283 = vmatprep.subr.mxu1 %v2402_v3 }
 0xbfb   :  { %v3385_v15 = vpop.eup %3384 }
 0xbfc   :  { %v2010_v17 = vmul.f32 %v3385_v15, %v3381_v31 }
 0xbfe   :  { %3265 = vmatmul.mubr.msk.f32.vlgmr.msra.gmra.mxu0 %vm568_vm2, %v2010_v17 }
 0xbff   :  { %3273 = vmatpush3.msra.mxu0 %v2306_v47  ;;  %v3040_v47 = vld [vmem:[#allocation28] ss:$0 sm:$0xff] }
 0xcb3   :  { %v2083_v22 = vpop.f32.mrf.mxu1 }
 0xcb4   :  { %3269 = vmatprep.mubr.msk.f32.mxu1 %vm568_vm2, %v2083_v22 }
 0xcb5   :  { %v3261_v59 = vpop.f32.mrf.mxu1 }
 0xcbe   :  { %v2159_v23 = vpop.f32.mrf.mxu0 }
 0xcbf   :  { %3270 = vmatmul.mubr.msk.f32.vlgmr.msra.gmra.mxu1 %vm568_vm2, %v2159_v23 }
 0xcc0   :  { %v3266_v24 = vpop.f32.mrf.mxu0  ;;  %3284 = vmatpush3.msra.mxu1 %v2402_v3 }
 0xcc1   :  { %3285 = vmatprep.subr.mxu1 %v2401_v4 }
 0xcc2   :  { %3286 = vmatpush3.msra.mxu1 %v2401_v4 }
 0xcc3   :  { %3287 = vmatprep.subr.mxu1 %v2400_v30 }
 0xcc4   :  { %3288 = vmatpush3.msra.mxu1 %v2400_v30 }
 0xcc5   :  { %3289 = vmatprep.subr.mxu1 %v2399_v5 }
 0xcc6   :  { %3290 = vmatpush3.msra.mxu1 %v2399_v5 }
 0xcc7   :  { %3305 = vmatprep.subr.mxu1 %v3830_v10 }
 0xd7f   :  { %v3271_v25 = vpop.f32.mrf.mxu1 }
 0xd80   :  { %v2246_v29 = vadd.f32 %v3271_v25, %v1828_v32 }
 0xd81   :  { %v2236_v33 = vpop.f32.mrf.mxu1 }
 0xd82   :  { %v2255_v16 = vadd.f32 %v3031_v27, %v2246_v29  ;;  %v2245_v19 = vadd.f32 %v2236_v33, %v1827_v63  ;;  %v3033_v63 = vld [vmem:[#allocation20] ss:$0 sm:$0xff] }
 0xd84   :  { %v2254_v20 = vadd.f32 %v3031_v27, %v2245_v19  ;;  %v2257_v34 = vadd.f32 %v2255_v16, %v4024_v9 }
 0xd86   :  { %v2263_v36 = vsel %vm301_vm0, %v2257_v34, 0.0  ;;  %v2256_v37 = vadd.f32 %v2254_v20, %v4022_v8  ;;  %v2305_v8 = vld [vmem:[#allocation22 + $0x10] sm:$0xff] }
 0xd87   :  { %2264 = vadd.xlane.f32.xlu0 %v2263_v36  ;;  %3274 = vmatprep.subr.mxu0 %v2305_v8 }
 0xd88   :  { %v2260_v38 = vsel %vm301_vm0, %v2256_v37, 0.0  ;;  %3275 = vmatpush3.msra.mxu0 %v2305_v8 }
 0xd89   :  { %2261 = vadd.xlane.f32.xlu1 %v2260_v38  ;;  %3276 = vmatprep.subr.mxu0 %v2304_v48  ;;  %v2542_v38 = vld [vmem:[%s4313_s18 + $0x18] sm:$0xff] }
 0xd8a   :  { %3277 = vmatpush3.msra.mxu0 %v2304_v48 }
 0xd8b   :  { %3278 = vmatprep.subr.mxu0 %v2303_v49 }
 0xd8c   :  { %3279 = vmatpush3.msra.mxu0 %v2303_v49 }
 0xd8d   :  { %3294 = vmatprep.subr.mxu0 %v2542_v38 }
 0xe10   :  { %v2265_v39 = vpop.xlane.xlu0 %2264 }
 0xe11   :  { %v2268_v18 = vmul.f32 0.03125, %v2265_v39  ;;  %v2541_v39 = vld [vmem:[%s4313_s18 + $0x10] sm:$0xff] }
 0xe12   :  { %v2262_v40 = vpop.xlane.xlu1 %2261 }
 0xe13   :  { %v2270_v41 = vsub.f32 %v2257_v34, %v2268_v18  ;;  %v2267_v42 = vmul.f32 0.03125, %v2262_v40  ;;  %v2540_v18 = vld [vmem:[%s4313_s18 + $0x8] sm:$0xff]  ;;  %v2539_v40 = vld [vmem:[%s4313_s18] sm:$0xff] }
 0xe15   :  { %v2269_v43 = vsub.f32 %v2256_v37, %v2267_v42  ;;  %v2272_v44 = vmul.f32 %v2270_v41, %v2270_v41 }
 0xe17   :  { %v2276_v45 = vsel %vm301_vm0, %v2272_v44, 0.0  ;;  %v2271_v46 = vmul.f32 %v2269_v43, %v2269_v43 }
 0xe18   :  { %2277 = vadd.xlane.f32.xlu1 %v2276_v45 }
 0xe19   :  { %v2273_v9 = vsel %vm301_vm0, %v2271_v46, 0.0 }
 0xe1a   :  { %2274 = vadd.xlane.f32.xlu0 %v2273_v9 }
 0xea1   :  { %v2278_v50 = vpop.xlane.xlu1 %2277 }
 0xea2   :  { %v2280_v51 = vmul.f32 0.03125, %v2278_v50 }
 0xea3   :  { %v2275_v52 = vpop.xlane.xlu0 %2274 }
 0xea4   :  { %v2282_v53 = vadd.f32 1e-05, %v2280_v51  ;;  %v2279_v54 = vmul.f32 0.03125, %v2275_v52  ;;  %v3041_v51 = vld [vmem:[#allocation29] ss:$0 sm:$0xff] }
 0xea6   :  { %3386 = vrsqrt.f32 %v2282_v53  ;;  %v2281_v55 = vadd.f32 1e-05, %v2279_v54 }
 0xea8   :  { %3388 = vrsqrt.f32 %v2281_v55 }
 0xeb3   :  { %v3387_v56 = vpop.eup %3386 }
 0xeb4   :  { %v2286_v60 = vmul.f32 %v3387_v56, %v2270_v41  ;;  %v3044_v56 = vld [vmem:[%s4314_s19] ss:$0 sm:$0xff]  ;;  %s3836_s19 = smov [#allocation31]  }
 0xeb5   :  { %v3389_v61 = vpop.eup %3388 }
 0xeb6   :  { %v2285_v32 = vmul.f32 %v3389_v61, %v2269_v43  ;;  %v2294_v62 = vmul.f32 %v3032_v58, %v2286_v60 }
 0xeb8   :  { %v2293_v0 = vmul.f32 %v3032_v58, %v2285_v32  ;;  %v2302_v2 = vadd.f32 %v3033_v63, %v2294_v62  ;;  %v2635_v62 = vld [vmem:[%s4315_s20] sm:$0x1]  ;;  %s2972_s20 = sshll.u32 %s3836_s19, 4  ;;  %s2973_s20 = int_to_ptr.vmem [resolvable:$true] %s2972_s20 }
 0xeb9   :  { %s3766_s7 = scalar_lea.vmem %s2973_s20, 32  ;;  %p3771_p7 = scmp.lt.s32.totalorder %s2973_s20, %s2973_s20 }
 0xeba   :  { %v2301_v1 = vadd.f32 %v3033_v63, %v2293_v0  ;;  %p3767_p6 = scmp.ne.s32.totalorder %s2973_s20, %s3766_s7  ;;  %p3772_p8 = scmp.lt.s32.totalorder %s3766_s7, %s3766_s7 }
 0xebc   :  { %3280 = vmatprep.mubr.msk.f32.mxu0 %vm301_vm0, %v2301_v1  ;;  %p3773_p9 = por %p3772_p8, %p3771_p7 }
 0xebd   :  { %3281 = vmatmul.mubr.msk.f32.vlgmr.msra.gmra.mxu0 %vm301_vm0, %v2302_v2 }
 0xebe   :  { %3295 = vmatpush3.msra.mxu0 %v2542_v38  ;;  %p3774_p10 = pnand %p3773_p9, %p3767_p6 }
 0xebf   :  { %3296 = vmatprep.subr.mxu0 %v2541_v39 }
 0xec0   :  { %3297 = vmatpush3.msra.mxu0 %v2541_v39 }
 0xec1   :  { %3298 = vmatprep.subr.mxu0 %v2540_v18 }
 0xec2   :  { %3299 = vmatpush3.msra.mxu0 %v2540_v18 }
 0xec3   :  { %3300 = vmatprep.subr.mxu0 %v2539_v40 }
 0xec4   :  { %3301 = vmatpush3.msra.mxu0 %v2539_v40 }
 0xec5   :  { %3315 = vmatprep.subr.mxu0 %v3830_v10 }
 0xf7d   :  { %v3282_v7 = vpop.f32.mrf.mxu0 }
 0xf7e   :  { %v2396_v31 = vadd.f32 %v3282_v7, %v3036_v6 }
 0xf7f   :  { %v2379_v11 = vpop.f32.mrf.mxu0 }
 0xf80   :  { %v2395_v35 = vadd.f32 %v3036_v6, %v2379_v11  ;;  %v2398_v13 = vmax.f32 %v2396_v31, 0.0 }
 0xf82   :  { %v2397_v12 = vmax.f32 %v2395_v35, 0.0 }
 0xf84   :  { %3291 = vmatprep.mubr.msk.f32.mxu1 %vm301_vm0, %v2397_v12 }
 0xf85   :  { %3292 = vmatmul.mubr.msk.f32.vlgmr.msra.gmra.mxu1 %vm301_vm0, %v2398_v13 }
 0xf86   :  { %3307 = vmatprep.mubr.msk.f32.mxu1 %vm3831_vm1, %v3830_v10 }
0x1045   :  { %v3293_v57 = vpop.f32.mrf.mxu1 }
0x1046   :  { %v2492_v15 = vadd.f32 %v3293_v57, %v3039_v14 }
0x1047   :  { %v2475_v17 = vpop.f32.mrf.mxu1 }
0x1048   :  { %v2491_v21 = vadd.f32 %v3039_v14, %v2475_v17  ;;  %v2494_v22 = vadd.f32 %v2492_v15, %v2302_v2 }
0x104a   :  { %v2500_v59 = vsel %vm301_vm0, %v2494_v22, 0.0  ;;  %v2493_v23 = vadd.f32 %v2491_v21, %v2301_v1 }
0x104b   :  { %2501 = vadd.xlane.f32.xlu1 %v2500_v59 }
0x104c   :  { %v2497_v24 = vsel %vm301_vm0, %v2493_v23, 0.0 }
0x104d   :  { %2498 = vadd.xlane.f32.xlu0 %v2497_v24 }
0x10d4   :  { %v2502_v25 = vpop.xlane.xlu1 %2501 }
0x10d5   :  { %v2504_v27 = vmul.f32 0.03125, %v2502_v25 }
0x10d6   :  { %v2499_v29 = vpop.xlane.xlu0 %2498 }
0x10d7   :  { %v2506_v33 = vsub.f32 %v2494_v22, %v2504_v27  ;;  %v2503_v16 = vmul.f32 0.03125, %v2499_v29 }
0x10d9   :  { %v2505_v19 = vsub.f32 %v2493_v23, %v2503_v16  ;;  %v2508_v20 = vmul.f32 %v2506_v33, %v2506_v33 }
0x10db   :  { %v2512_v34 = vsel %vm301_vm0, %v2508_v20, 0.0  ;;  %v2507_v36 = vmul.f32 %v2505_v19, %v2505_v19 }
0x10dc   :  { %2513 = vadd.xlane.f32.xlu1 %v2512_v34 }
0x10dd   :  { %v2509_v37 = vsel %vm301_vm0, %v2507_v36, 0.0 }
0x10de   :  { %2510 = vadd.xlane.f32.xlu0 %v2509_v37 }
0x1165   :  { %v2514_v41 = vpop.xlane.xlu1 %2513 }
0x1166   :  { %v2516_v42 = vmul.f32 0.03125, %v2514_v41 }
0x1167   :  { %v2511_v43 = vpop.xlane.xlu0 %2510 }
0x1168   :  { %v2518_v44 = vadd.f32 1e-05, %v2516_v42  ;;  %v2515_v45 = vmul.f32 0.03125, %v2511_v43 }
0x116a   :  { %3390 = vrsqrt.f32 %v2518_v44  ;;  %v2517_v46 = vadd.f32 1e-05, %v2515_v45 }
0x116c   :  { %3392 = vrsqrt.f32 %v2517_v46 }
0x1177   :  { %v3391_v9 = vpop.eup %3390 }
0x1178   :  { %v2522_v8 = vmul.f32 %v3391_v9, %v2506_v33 }
0x1179   :  { %v3393_v48 = vpop.eup %3392 }
0x117a   :  { %v2521_v49 = vmul.f32 %v3393_v48, %v2505_v19  ;;  %v2530_v50 = vmul.f32 %v3040_v47, %v2522_v8 }
0x117c   :  { %v2529_v52 = vmul.f32 %v3040_v47, %v2521_v49  ;;  %v2538_v54 = vadd.f32 %v3041_v51, %v2530_v50 }
0x117e   :  { %v2537_v53 = vadd.f32 %v3041_v51, %v2529_v52 }
0x1180   :  { %3302 = vmatprep.mubr.msk.f32.mxu0 %vm301_vm0, %v2537_v53 }
0x1181   :  { %3303 = vmatmul.mubr.msk.f32.vlgmr.msra.gmra.mxu0 %vm301_vm0, %v2538_v54 }
0x1182   :  { %3316 = vmatpush3.msra.mxu0 %v2537_v53  ;;  %3317 = vmatprep.mubr.msk.f32.mxu0 %vm3831_vm1, %v3830_v10 }
0x1241   :  { %v3304_v55 = vpop.f32.mrf.mxu0 }
0x1242   :  { %v2632_v61 = vadd.f32 %v3304_v55, %v3044_v56 }
0x1243   :  { %v2615_v58 = vpop.f32.mrf.mxu0 }
0x1244   :  { %v2631_v60 = vadd.f32 %v3044_v56, %v2615_v58 }
0x1246   :  { %3394 = vtanh.f32 %v2631_v60 }
0x1247   :  { %3396 = vtanh.f32 %v2632_v61 }
0x1253   :  { %v3395_v32 = vpop.eup %3394 }
0x1254   :  { %3306 = vmatpush3.xpose.msk.msra.mxu1 %vm301_vm0, %v3395_v32  ;;  %v3397_v63 = vpop.eup %3396 }
0x1255   :  { %3310 = vmatprep.subr.mxu1 %v3830_v10 }
0x1257   :  { %3308 = vmatmul.mubr.msk.f32.vlgmr.msra.gmra.mxu1 %vm301_vm0, %v2635_v62 }
0x1258   :  { %3311 = vmatpush3.xpose.msk.msra.mxu1 %vm301_vm0, %v3397_v63  ;;  %3312 = vmatprep.mubr.msk.f32.mxu1 %vm3831_vm1, %v3830_v10 }
0x1259   :  { %3320 = vmatprep.subr.mxu1 %v3830_v10 }
0x125b   :  { %3313 = vmatmul.mubr.msk.f32.vlgmr.msra.gmra.mxu1 %vm301_vm0, %v2635_v62 }
0x125c   :  { %3321 = vmatpush3.msra.mxu1 %v2538_v54  ;;  %3322 = vmatprep.mubr.msk.f32.mxu1 %vm3831_vm1, %v3830_v10 }
0x1317   :  { %v2708_v0 = vpop.f32.mrf.mxu1 }
0x1318   :  { %v2785_v1 = vmul.f32 0.17677669, %v2708_v0 }
0x1319   :  { %v3309_v2 = vpop.f32.mrf.mxu1 }
0x131a   :  { %v2787_v3 = vsel %vm723_vm3, %v2785_v1, -1e+09 }
0x131b   :  { %v2781_v4 = vpop.f32.mrf.mxu1  ;;  %v2790_v30 = vsel %vm2789_vm7, %v2787_v3, -inf }
0x131c   :  { %v2786_v5 = vmul.f32 0.17677669, %v2781_v4  ;;  %2791 = vmax.xlane.f32.xlu1 %v2790_v30 }
0x131d   :  { %v3314_v6 = vpop.f32.mrf.mxu1 }
0x131e   :  { %v2788_v7 = vsel %vm724_vm4, %v2786_v5, -1e+09 }
0x131f   :  { %v2793_v31 = vsel %vm2789_vm7, %v2788_v7, -inf }
0x1320   :  { %2794 = vmax.xlane.f32.xlu0 %v2793_v31 }
0x13a5   :  { %v2792_v10 = vpop.xlane.xlu1 %2791 }
0x13a6   :  { %v2796_v11 = vsub.f32 %v2787_v3, %v2792_v10 }
0x13a8   :  { %v2798_v35 = vmul.f32 1.442695, %v2796_v11 }
0x13a9   :  { %v2795_v12 = vpop.xlane.xlu0 %2794 }
0x13aa   :  { %3398 = vpow2.f32 %v2798_v35  ;;  %v2797_v13 = vsub.f32 %v2788_v7, %v2795_v12 }
0x13ac   :  { %v2800_v26 = vmul.f32 1.442695, %v2797_v13 }
0x13ae   :  { %3400 = vpow2.f32 %v2800_v26 }
0x13b7   :  { %v3399_v14 = vpop.eup %3398 }
0x13b8   :  { %v2802_v57 = vsel %vm2789_vm7, %v3399_v14, 0.0 }
0x13b9   :  { %2803 = vadd.xlane.f32.xlu1 %v2802_v57 }
0x13bb   :  { %v3401_v15 = vpop.eup %3400 }
0x13bc   :  { %v2805_v17 = vsel %vm2789_vm7, %v3401_v15, 0.0 }
0x13bd   :  { %2806 = vadd.xlane.f32.xlu0 %v2805_v17 }
0x1442   :  { %v2804_v28 = vpop.xlane.xlu1 %2803 }
0x1443   :  { %3402 = vrcp.f32 %v2804_v28 }
0x1446   :  { %v2807_v21 = vpop.xlane.xlu0 %2806 }
0x1447   :  { %3404 = vrcp.f32 %v2807_v21 }
0x1450   :  { %v3403_v22 = vpop.eup %3402 }
0x1451   :  { %v2809_v59 = vmul.f32 %v3403_v22, %v3399_v14 }
0x1453   :  { %3318 = vmatmul.mubr.msk.f32.vlgmr.msra.gmra.mxu0 %vm568_vm2, %v2809_v59 }
0x1454   :  { %v3405_v23 = vpop.eup %3404 }
0x1455   :  { %v2811_v24 = vmul.f32 %v3405_v23, %v3401_v15 }
0x1457   :  { %3323 = vmatmul.mubr.msk.f32.vlgmr.msra.gmra.mxu1 %vm568_vm2, %v2811_v24 }
0x1513   :  { %v2881_v25 = vpop.f32.mrf.mxu0 }
0x1515   :  { %v3319_v27 = vpop.f32.mrf.mxu0 }
0x1517   :  { %v2954_v29 = vpop.f32.mrf.mxu1 }
0x1518   :  { %v2960_v33 = vrot.slane %v2954_v29, 7 }
0x1519   :  { %v3324_v16 = vpop.f32.mrf.mxu1 }
0x151a   :  { %v2962_v19 = vsel %vm2961_vm8, %v2960_v33, %v2881_v25 }
0x151b   :  { %2965 = vst.msk [vmem:[#allocation31] sm:$0x3] %vm2964_vm9, %v2962_v19 }
0x151c   :  { %3777 = shalt.err (!%p3774_p10)
}
0x151d   :  { %2975 = dma.vmem_to_hbm [thread:$0]  %s2973_s20, 32, %s4316_s21, [#allocation4]  }
0x151e   :  { %3806 = dma.done.wait [#allocation4], 32  }
0x151f   :  { %3807 = vsyncadd [#allocation4], 4294967264 }
0x1520   :  { %2979 = vsyncpa [#allocation3], 1 }
0x1521   :  { %2980 = vsyncpa [#allocation6], 1 }
0x1522   :  { %2981 = vsyncpa [#allocation9], 1 }
0x1523   :  { %2982 = vsyncpa [#allocation12], 1 }
0x1524   :  { %2983 = vsyncpa [#allocation15], 1 }
0x1525   :  { %2984 = vsyncpa [#allocation18], 1 }
0x1526   :  { %2985 = vsyncpa [#allocation21], 1 }
0x1527   :  { %2986 = vsyncpa [#allocation24], 1 }
0x1528   :  { %2987 = vsyncpa [#allocation27], 1 }
0x1529   :  { %2988 = vsyncpa [#allocation30], 1 }
0x152a   :  { %2989 = vsyncpa [#allocation4], 1 }

</bundles_post_ra>
